<compile_context>
chip_gen: v6e
topology: v6e:2x2x1
jax: 0.10.0
libtpu: 0.0.40
codegen_flags: <defaults>
</compile_context>

<pallas_src>
import functools

import jax
import jax.numpy as jnp
from jax.experimental import pallas as pl
from jax.experimental.pallas import tpu as pltpu

# ----------------------------- config ---------------------------------------
VOCAB = 64
HIDDEN = 128          # lane-friendly hidden size (codebert-base uses 768)
N_HEADS = 4
HEAD_DIM = HIDDEN // N_HEADS
N_LAYERS = 2
INTERMEDIATE = 256
SEQ = 8
BATCH = 2
N_POS = 2
N_NEG = 2
LN_EPS = 1e-5
SEMANTIC_MATCH_FACTOR = 0.1


# ------------------ Pallas kernel: fused encoder + pooler -------------------
def encoder_kernel(x_ref, mask_ref,
                   wq_ref, bq_ref, wk_ref, bk_ref, wv_ref, bv_ref,
                   wo_ref, bo_ref, ln1_g_ref, ln1_b_ref,
                   w1_ref, b1_ref, w2_ref, b2_ref, ln2_g_ref, ln2_b_ref,
                   pw_ref, pb_ref,
                   pooled_ref, act_ref):
    """Grid = (chunk, layer). Activations live in act_ref across the layer axis."""
    layer = pl.program_id(1)
    n_layers = pl.num_programs(1)
    cs = act_ref.shape[0]                 # chunk * SEQ rows
    chunk = cs // SEQ

    @pl.when(layer == 0)
    def _():
        act_ref[...] = x_ref[0].astype(jnp.float32)

    x = act_ref[...]                      # (cs, H) f32
    add_mask = mask_ref[0]                # (cs, cs) f32 additive (0 / -1e9)

    def layer_norm(v, g, b):
        mu = jnp.mean(v, axis=-1, keepdims=True)
        var = jnp.mean((v - mu) ** 2, axis=-1, keepdims=True)
        return (v - mu) * jax.lax.rsqrt(var + LN_EPS) * g + b

    # --- self attention: flattened (cs, H) GEMMs, per-head 2-D score dots ---
    xb = x.astype(jnp.bfloat16)
    q = jnp.dot(xb, wq_ref[0], preferred_element_type=jnp.float32) + bq_ref[0]
    k = jnp.dot(xb, wk_ref[0], preferred_element_type=jnp.float32) + bk_ref[0]
    v = jnp.dot(xb, wv_ref[0], preferred_element_type=jnp.float32) + bv_ref[0]

    scale = 1.0 / (HEAD_DIM ** 0.5)
    ctx_heads = []
    for h in range(N_HEADS):              # static unrolled loop (4 heads)
        lo = h * HEAD_DIM
        qh = q[:, lo:lo + HEAD_DIM]       # (cs, HD)
        kh = k[:, lo:lo + HEAD_DIM]
        vh = v[:, lo:lo + HEAD_DIM]
        scores = jax.lax.dot_general(
            qh, kh, (((1,), (1,)), ((), ())),
            preferred_element_type=jnp.float32) * scale + add_mask   # (cs, cs)
        m = jnp.max(scores, axis=-1, keepdims=True)
        e = jnp.exp(scores - m)
        denom = jnp.sum(e, axis=-1, keepdims=True)
        probs = e * pl.reciprocal(denom, approx=True)
        ctx_heads.append(jnp.dot(probs, vh, preferred_element_type=jnp.float32))
    ctx = jnp.concatenate(ctx_heads, axis=-1)                        # (cs, H)

    attn_out = jnp.dot(ctx.astype(jnp.bfloat16), wo_ref[0],
                       preferred_element_type=jnp.float32) + bo_ref[0]
    x1 = layer_norm(x + attn_out, ln1_g_ref[0], ln1_b_ref[0])

    # --- feed forward ---
    # TODO(synk): HF codebert uses exact (erf) GELU; tanh approximation used
    # here for guaranteed Mosaic lowering.
    hmid = jax.nn.gelu(jnp.dot(x1.astype(jnp.bfloat16), w1_ref[0],
                               preferred_element_type=jnp.float32) + b1_ref[0])
    ffn = jnp.dot(hmid.astype(jnp.bfloat16), w2_ref[0],
                  preferred_element_type=jnp.float32) + b2_ref[0]
    out = layer_norm(x1 + ffn, ln2_g_ref[0], ln2_b_ref[0])
    act_ref[...] = out

    # --- fused pooler epilogue on the last layer ---
    @pl.when(layer == n_layers - 1)
    def _():
        cls = out.reshape(chunk, SEQ, HIDDEN)[:, 0, :]               # (chunk, H)
        pooled = jnp.tanh(
            jnp.dot(cls.astype(jnp.bfloat16), pw_ref[...],
                    preferred_element_type=jnp.float32) + pb_ref[...])
        pooled_ref[0] = pooled.astype(pooled_ref.dtype)


def encode_all(params, all_ids, all_mask):
    """Encode all sequences at once. Returns pooler output (N, HIDDEN)."""
    n, s = all_ids.shape
    nchunk = 2 if (n % 2 == 0 and n >= 2) else 1       # even split for v7x 2 TCs
    chunk = n // nchunk
    cs = chunk * s

    # embeddings (gather + layernorm) stay in XLA glue
    x = embed(params, all_ids)                                       # (N, S, H) f32
    x = x.reshape(nchunk, cs, HIDDEN).astype(jnp.bfloat16)

    # block-diagonal additive mask: forbid cross-sequence attention and padded keys
    key_ok = all_mask.astype(jnp.float32).reshape(nchunk, cs)        # (nchunk, cs)
    seq_id = jnp.arange(cs, dtype=jnp.int32) // s
    same = (seq_id[:, None] == seq_id[None, :]).astype(jnp.float32)  # (cs, cs)
    allowed = same[None, :, :] * key_ok[:, None, :]                  # (nchunk, cs, cs)
    add_mask = (1.0 - allowed) * jnp.float32(-1e9)

    xmap = lambda c, l: (c, 0, 0)
    lmap = lambda c, l: (l, 0, 0)
    cmap = lambda c, l: (0, 0)
    H, I = HIDDEN, INTERMEDIATE

    in_specs = [
        pl.BlockSpec((1, cs, H), xmap),                 # x
        pl.BlockSpec((1, cs, cs), xmap),                # additive mask
        pl.BlockSpec((1, H, H), lmap), pl.BlockSpec((1, 1, H), lmap),   # wq, bq
        pl.BlockSpec((1, H, H), lmap), pl.BlockSpec((1, 1, H), lmap),   # wk, bk
        pl.BlockSpec((1, H, H), lmap), pl.BlockSpec((1, 1, H), lmap),   # wv, bv
        pl.BlockSpec((1, H, H), lmap), pl.BlockSpec((1, 1, H), lmap),   # wo, bo
        pl.BlockSpec((1, 1, H), lmap), pl.BlockSpec((1, 1, H), lmap),   # ln1 g/b
        pl.BlockSpec((1, H, I), lmap), pl.BlockSpec((1, 1, I), lmap),   # w1, b1
        pl.BlockSpec((1, I, H), lmap), pl.BlockSpec((1, 1, H), lmap),   # w2, b2
        pl.BlockSpec((1, 1, H), lmap), pl.BlockSpec((1, 1, H), lmap),   # ln2 g/b
        pl.BlockSpec((H, H), cmap), pl.BlockSpec((1, H), cmap),         # pooler w/b
    ]

    pooled = pl.pallas_call(
        encoder_kernel,
        out_shape=jax.ShapeDtypeStruct((nchunk, chunk, HIDDEN), jnp.float32),
        grid=(nchunk, N_LAYERS),
        in_specs=in_specs,
        out_specs=pl.BlockSpec((1, chunk, HIDDEN), xmap),
        scratch_shapes=[pltpu.VMEM((cs, HIDDEN), jnp.float32)],
        compiler_params=pltpu.CompilerParams(
            dimension_semantics=("parallel", "arbitrary")),
    )(x, add_mask,
      params['wq'], params['bq'], params['wk'], params['bk'],
      params['wv'], params['bv'], params['wo'], params['bo'],
      params['ln1_g'], params['ln1_b'],
      params['w1'], params['b1'], params['w2'], params['b2'],
      params['ln2_g'], params['ln2_b'],
      params['pooler_w'], params['pooler_b'])

    return pooled.reshape(n, HIDDEN)


# ------------------------------ encoder glue ---------------------------------
def embed(params, input_ids):
    we = params['word_emb'][input_ids]                               # (N, S, H)
    pe = params['pos_emb'][None, :input_ids.shape[1], :]
    te = params['type_emb'][0][None, None, :]
    e = we + pe + te
    mu = e.mean(-1, keepdims=True)
    var = ((e - mu) ** 2).mean(-1, keepdims=True)
    return (e - mu) * jax.lax.rsqrt(var + LN_EPS) * params['emb_ln_g'] \
        + params['emb_ln_b']


# ------------------------------ full forward ---------------------------------
def codebert_forward(params,
                     input_ids, attention_mask,
                     pos_input_ids, pos_attn_mask, pos_semantic_scores,
                     neg_input_ids, neg_attn_mask, neg_semantic_scores):
    b, p, s = pos_input_ids.shape
    nn_ = neg_input_ids.shape[1]

    # Fuse anchor / positive / negative encodes into one pass (same encoder).
    all_ids = jnp.concatenate(
        [input_ids, pos_input_ids.reshape(-1, s), neg_input_ids.reshape(-1, s)], 0)
    all_mask = jnp.concatenate(
        [attention_mask, pos_attn_mask.reshape(-1, s), neg_attn_mask.reshape(-1, s)], 0)

    pooled = encode_all(params, all_ids, all_mask)                   # (B+BP+BN, H)
    input_vector = pooled[:b]
    pos_vecs = pooled[b:b + b * p].reshape(b, p, -1)
    neg_vecs = pooled[b + b * p:].reshape(b, nn_, -1)

    # cosine sims + loss: tiny lane-sparse reductions -> plain JAX glue.
    def norm(v):
        return v * jax.lax.rsqrt(jnp.sum(v * v, -1, keepdims=True) + 1e-8)
    a_n, p_n, n_n = norm(input_vector), norm(pos_vecs), norm(neg_vecs)
    pos_sim = jnp.einsum('bph,bh->bp', p_n, a_n)
    neg_sim = jnp.einsum('bnh,bh->bn', n_n, a_n)

    # TODO(synk): exact CrossMatchLoss definition is not in the provided source;
    # using a semantic-score-blended cosine regression objective with the same
    # semantic_match_factor semantics.
    f = SEMANTIC_MATCH_FACTOR
    target_pos = (1.0 - f) + f * pos_semantic_scores
    target_neg = f * neg_semantic_scores
    loss = jnp.mean((pos_sim - target_pos) ** 2) \
        + jnp.mean((neg_sim - target_neg) ** 2)
    return loss


# ------------------------------ params ---------------------------------------
def init_params(key):
    keys = jax.random.split(key, 16)
    it = iter(range(16))

    def nrm(shape, dtype=jnp.float32):
        return (jax.random.normal(keys[next(it)], shape, jnp.float32)
                * 0.02).astype(dtype)

    L, H, I = N_LAYERS, HIDDEN, INTERMEDIATE
    bf = jnp.bfloat16
    return dict(
        word_emb=nrm((VOCAB, H)),
        pos_emb=nrm((SEQ, H)),
        type_emb=nrm((1, H)),
        emb_ln_g=jnp.ones((H,), jnp.float32),
        emb_ln_b=jnp.zeros((H,), jnp.float32),
        pooler_w=nrm((H, H), bf),
        pooler_b=jnp.zeros((1, H), jnp.float32),
        # per-layer params stacked along a leading layer axis
        wq=nrm((L, H, H), bf), bq=jnp.zeros((L, 1, H), jnp.float32),
        wk=nrm((L, H, H), bf), bk=jnp.zeros((L, 1, H), jnp.float32),
        wv=nrm((L, H, H), bf), bv=jnp.zeros((L, 1, H), jnp.float32),
        wo=nrm((L, H, H), bf), bo=jnp.zeros((L, 1, H), jnp.float32),
        ln1_g=jnp.ones((L, 1, H), jnp.float32),
        ln1_b=jnp.zeros((L, 1, H), jnp.float32),
        w1=nrm((L, H, I), bf), b1=jnp.zeros((L, 1, I), jnp.float32),
        w2=nrm((L, I, H), bf), b2=jnp.zeros((L, 1, H), jnp.float32),
        ln2_g=jnp.ones((L, 1, H), jnp.float32),
        ln2_b=jnp.zeros((L, 1, H), jnp.float32),
    )


# --------------------------------- main ---------------------------------------
if __name__ == "__main__":
    key = jax.random.PRNGKey(0)
    k_param, k_ids, k_pids, k_nids, k_ps, k_ns = jax.random.split(key, 6)

    params = init_params(k_param)

    input_ids = jax.random.randint(k_ids, (BATCH, SEQ), 0, VOCAB, jnp.int32)
    attention_mask = jnp.ones((BATCH, SEQ), jnp.int32).at[:, -2:].set(0)

    pos_input_ids = jax.random.randint(k_pids, (BATCH, N_POS, SEQ), 0, VOCAB,
                                       jnp.int32)
    pos_attn_mask = jnp.ones((BATCH, N_POS, SEQ), jnp.int32)
    pos_semantic_scores = jax.random.uniform(k_ps, (BATCH, N_POS), jnp.float32)

    neg_input_ids = jax.random.randint(k_nids, (BATCH, N_NEG, SEQ), 0, VOCAB,
                                       jnp.int32)
    neg_attn_mask = jnp.ones((BATCH, N_NEG, SEQ), jnp.int32)
    neg_semantic_scores = jax.random.uniform(k_ns, (BATCH, N_NEG), jnp.float32)

    fwd = jax.jit(functools.partial(codebert_forward, params))
    loss = fwd(input_ids, attention_mask,
               pos_input_ids, pos_attn_mask, pos_semantic_scores,
               neg_input_ids, neg_attn_mask, neg_semantic_scores)
    jax.block_until_ready(loss)
    assert loss.shape == () and jnp.isfinite(loss)
    print("KERNEL_OK")
</pallas_src>

<mosaic_0001>
module attributes {stable_mosaic.version = 11 : i64} {
  func.func @encoder_kernel(%arg0: i32, %arg1: i32, %arg2: memref<1x40x128xbf16, #tpu.memory_space<vmem>>, %arg3: memref<1x40x40xf32, #tpu.memory_space<vmem>>, %arg4: memref<1x128x128xbf16, #tpu.memory_space<vmem>>, %arg5: memref<1x1x128xf32, #tpu.memory_space<vmem>>, %arg6: memref<1x128x128xbf16, #tpu.memory_space<vmem>>, %arg7: memref<1x1x128xf32, #tpu.memory_space<vmem>>, %arg8: memref<1x128x128xbf16, #tpu.memory_space<vmem>>, %arg9: memref<1x1x128xf32, #tpu.memory_space<vmem>>, %arg10: memref<1x128x128xbf16, #tpu.memory_space<vmem>>, %arg11: memref<1x1x128xf32, #tpu.memory_space<vmem>>, %arg12: memref<1x1x128xf32, #tpu.memory_space<vmem>>, %arg13: memref<1x1x128xf32, #tpu.memory_space<vmem>>, %arg14: memref<1x128x256xbf16, #tpu.memory_space<vmem>>, %arg15: memref<1x1x256xf32, #tpu.memory_space<vmem>>, %arg16: memref<1x256x128xbf16, #tpu.memory_space<vmem>>, %arg17: memref<1x1x128xf32, #tpu.memory_space<vmem>>, %arg18: memref<1x1x128xf32, #tpu.memory_space<vmem>>, %arg19: memref<1x1x128xf32, #tpu.memory_space<vmem>>, %arg20: memref<128x128xbf16, #tpu.memory_space<vmem>>, %arg21: memref<1x128xf32, #tpu.memory_space<vmem>>, %arg22: memref<1x5x128xf32, #tpu.memory_space<vmem>>, %arg23: memref<40x128xf32, #tpu.memory_space<vmem>>) attributes {dimension_semantics = [#tpu.dimension_semantics<parallel>, #tpu.dimension_semantics<arbitrary>], iteration_bounds = array<i64: 2, 2>, scalar_prefetch = 0 : i64, scratch_operands = 1 : i64, tpu.core_type = #tpu.core_type<tc>, window_params = [{transform_indices = @transform_0, window_bounds = array<i64: 1, 40, 128>}, {transform_indices = @transform_1, window_bounds = array<i64: 1, 40, 40>}, {transform_indices = @transform_2, window_bounds = array<i64: 1, 128, 128>}, {transform_indices = @transform_3, window_bounds = array<i64: 1, 1, 128>}, {transform_indices = @transform_4, window_bounds = array<i64: 1, 128, 128>}, {transform_indices = @transform_5, window_bounds = array<i64: 1, 1, 128>}, {transform_indices = @transform_6, window_bounds = array<i64: 1, 128, 128>}, {transform_indices = @transform_7, window_bounds = array<i64: 1, 1, 128>}, {transform_indices = @transform_8, window_bounds = array<i64: 1, 128, 128>}, {transform_indices = @transform_9, window_bounds = array<i64: 1, 1, 128>}, {transform_indices = @transform_10, window_bounds = array<i64: 1, 1, 128>}, {transform_indices = @transform_11, window_bounds = array<i64: 1, 1, 128>}, {transform_indices = @transform_12, window_bounds = array<i64: 1, 128, 256>}, {transform_indices = @transform_13, window_bounds = array<i64: 1, 1, 256>}, {transform_indices = @transform_14, window_bounds = array<i64: 1, 256, 128>}, {transform_indices = @transform_15, window_bounds = array<i64: 1, 1, 128>}, {transform_indices = @transform_16, window_bounds = array<i64: 1, 1, 128>}, {transform_indices = @transform_17, window_bounds = array<i64: 1, 1, 128>}, {pipeline_mode = #tpu.pipeline_mode<synchronous>, transform_indices = @transform_18, window_bounds = array<i64: 128, 128>}, {pipeline_mode = #tpu.pipeline_mode<synchronous>, transform_indices = @transform_19, window_bounds = array<i64: 1, 128>}, {transform_indices = @transform_20, window_bounds = array<i64: 1, 5, 128>}]} {
    %c0_i32 = arith.constant 0 : i32
    %0 = arith.cmpi eq, %arg1, %c0_i32 : i32
    %1 = arith.extui %0 : i1 to i32
    %c0_i32_0 = arith.constant 0 : i32
    %2 = arith.cmpi ne, %1, %c0_i32_0 : i32
    scf.if %2 {
      %c0_95 = arith.constant 0 : index
      %c0_96 = arith.constant 0 : index
      %c0_97 = arith.constant 0 : index
      %196 = vector.load %arg2[%c0_95, %c0_96, %c0_97] : memref<1x40x128xbf16, #tpu.memory_space<vmem>>, vector<1x40x128xbf16>
      %197 = vector.shape_cast %196 : vector<1x40x128xbf16> to vector<40x128xbf16>
      %198 = arith.extf %197 : vector<40x128xbf16> to vector<40x128xf32>
      %c0_98 = arith.constant 0 : index
      %c0_99 = arith.constant 0 : index
      %199 = vector.load %arg23[%c0_98, %c0_99] : memref<40x128xf32, #tpu.memory_space<vmem>>, vector<40x128xf32>
      tpu.vector_store %arg23[%c0_98, %c0_99], %198 {strides = array<i32>} : memref<40x128xf32, #tpu.memory_space<vmem>>, vector<40x128xf32>,
    } else {
    }
    %c0 = arith.constant 0 : index
    %c0_1 = arith.constant 0 : index
    %3 = vector.load %arg23[%c0, %c0_1] : memref<40x128xf32, #tpu.memory_space<vmem>>, vector<40x128xf32>
    %c0_2 = arith.constant 0 : index
    %c0_3 = arith.constant 0 : index
    %c0_4 = arith.constant 0 : index
    %4 = vector.load %arg3[%c0_2, %c0_3, %c0_4] : memref<1x40x40xf32, #tpu.memory_space<vmem>>, vector<1x40x40xf32>
    %5 = vector.shape_cast %4 : vector<1x40x40xf32> to vector<40x40xf32>
    %6 = arith.truncf %3 : vector<40x128xf32> to vector<40x128xbf16>
    %c0_5 = arith.constant 0 : index
    %c0_6 = arith.constant 0 : index
    %c0_7 = arith.constant 0 : index
    %7 = vector.load %arg4[%c0_5, %c0_6, %c0_7] : memref<1x128x128xbf16, #tpu.memory_space<vmem>>, vector<1x128x128xbf16>
    %8 = vector.shape_cast %7 : vector<1x128x128xbf16> to vector<128x128xbf16>
    %cst = arith.constant dense<0.000000e+00> : vector<40x128xf32>
    %9 = tpu.matmul %6, %8, %cst {dimension_numbers = #tpu.dot_dimension_numbers<[1], [0], [0], [1], [0, 0, 1, 1], [], []>} : vector<40x128xbf16>, vector<128x128xbf16>, vector<40x128xf32> -> vector<40x128xf32>
    %c0_8 = arith.constant 0 : index
    %c0_9 = arith.constant 0 : index
    %c0_10 = arith.constant 0 : index
    %10 = vector.load %arg5[%c0_8, %c0_9, %c0_10] : memref<1x1x128xf32, #tpu.memory_space<vmem>>, vector<1x1x128xf32>
    %11 = vector.shape_cast %10 : vector<1x1x128xf32> to vector<1x128xf32>
    %12 = vector.broadcast %11 : vector<1x128xf32> to vector<40x128xf32>
    %13 = arith.addf %9, %12 : vector<40x128xf32>
    %c0_11 = arith.constant 0 : index
    %c0_12 = arith.constant 0 : index
    %c0_13 = arith.constant 0 : index
    %14 = vector.load %arg6[%c0_11, %c0_12, %c0_13] : memref<1x128x128xbf16, #tpu.memory_space<vmem>>, vector<1x128x128xbf16>
    %15 = vector.shape_cast %14 : vector<1x128x128xbf16> to vector<128x128xbf16>
    %cst_14 = arith.constant dense<0.000000e+00> : vector<40x128xf32>
    %16 = tpu.matmul %6, %15, %cst_14 {dimension_numbers = #tpu.dot_dimension_numbers<[1], [0], [0], [1], [0, 0, 1, 1], [], []>} : vector<40x128xbf16>, vector<128x128xbf16>, vector<40x128xf32> -> vector<40x128xf32>
    %c0_15 = arith.constant 0 : index
    %c0_16 = arith.constant 0 : index
    %c0_17 = arith.constant 0 : index
    %17 = vector.load %arg7[%c0_15, %c0_16, %c0_17] : memref<1x1x128xf32, #tpu.memory_space<vmem>>, vector<1x1x128xf32>
    %18 = vector.shape_cast %17 : vector<1x1x128xf32> to vector<1x128xf32>
    %19 = vector.broadcast %18 : vector<1x128xf32> to vector<40x128xf32>
    %20 = arith.addf %16, %19 : vector<40x128xf32>
    %c0_18 = arith.constant 0 : index
    %c0_19 = arith.constant 0 : index
    %c0_20 = arith.constant 0 : index
    %21 = vector.load %arg8[%c0_18, %c0_19, %c0_20] : memref<1x128x128xbf16, #tpu.memory_space<vmem>>, vector<1x128x128xbf16>
    %22 = vector.shape_cast %21 : vector<1x128x128xbf16> to vector<128x128xbf16>
    %cst_21 = arith.constant dense<0.000000e+00> : vector<40x128xf32>
    %23 = tpu.matmul %6, %22, %cst_21 {dimension_numbers = #tpu.dot_dimension_numbers<[1], [0], [0], [1], [0, 0, 1, 1], [], []>} : vector<40x128xbf16>, vector<128x128xbf16>, vector<40x128xf32> -> vector<40x128xf32>
    %c0_22 = arith.constant 0 : index
    %c0_23 = arith.constant 0 : index
    %c0_24 = arith.constant 0 : index
    %24 = vector.load %arg9[%c0_22, %c0_23, %c0_24] : memref<1x1x128xf32, #tpu.memory_space<vmem>>, vector<1x1x128xf32>
    %25 = vector.shape_cast %24 : vector<1x1x128xf32> to vector<1x128xf32>
    %26 = vector.broadcast %25 : vector<1x128xf32> to vector<40x128xf32>
    %27 = arith.addf %23, %26 : vector<40x128xf32>
    %28 = vector.extract_strided_slice %13 {offsets = [0, 0], sizes = [40, 32], strides = [1, 1]} : vector<40x128xf32> to vector<40x32xf32>
    %29 = vector.extract_strided_slice %20 {offsets = [0, 0], sizes = [40, 32], strides = [1, 1]} : vector<40x128xf32> to vector<40x32xf32>
    %30 = vector.extract_strided_slice %27 {offsets = [0, 0], sizes = [40, 32], strides = [1, 1]} : vector<40x128xf32> to vector<40x32xf32>
    %cst_25 = arith.constant dense<0.000000e+00> : vector<40x40xf32>
    %31 = tpu.matmul %28, %29, %cst_25 {dimension_numbers = #tpu.dot_dimension_numbers<[1], [1], [0], [0], [0, 0, 1, 0], [], []>} : vector<40x32xf32>, vector<40x32xf32>, vector<40x40xf32> -> vector<40x40xf32>
    %cst_26 = arith.constant 0.176776692 : f32
    %32 = vector.broadcast %cst_26 : f32 to vector<40x40xf32>
    %33 = arith.mulf %31, %32 : vector<40x40xf32>
    %34 = arith.addf %33, %5 : vector<40x40xf32>
    %cst_27 = arith.constant dense<0xFF800000> : vector<40xf32>
    %35 = vector.multi_reduction <maximumf>, %34, %cst_27 [1] : vector<40x40xf32> to vector<40xf32>
    %36 = vector.shape_cast %35 : vector<40xf32> to vector<40x1xf32>
    %37 = vector.broadcast %36 : vector<40x1xf32> to vector<40x40xf32>
    %38 = arith.subf %34, %37 : vector<40x40xf32>
    %39 = math.exp %38 : vector<40x40xf32>
    %cst_28 = arith.constant dense<0.000000e+00> : vector<40xf32>
    %40 = vector.multi_reduction <add>, %39, %cst_28 [1] : vector<40x40xf32> to vector<40xf32>
    %41 = vector.shape_cast %40 : vector<40xf32> to vector<40x1xf32>
    %42 = tpu.reciprocal %41 {approx = true} : vector<40x1xf32> -> vector<40x1xf32>
    %43 = vector.broadcast %42 : vector<40x1xf32> to vector<40x40xf32>
    %44 = arith.mulf %39, %43 : vector<40x40xf32>
    %cst_29 = arith.constant dense<0.000000e+00> : vector<40x32xf32>
    %45 = tpu.matmul %44, %30, %cst_29 {dimension_numbers = #tpu.dot_dimension_numbers<[1], [0], [0], [1], [0, 0, 1, 1], [], []>} : vector<40x40xf32>, vector<40x32xf32>, vector<40x32xf32> -> vector<40x32xf32>
    %46 = vector.extract_strided_slice %13 {offsets = [0, 32], sizes = [40, 32], strides = [1, 1]} : vector<40x128xf32> to vector<40x32xf32>
    %47 = vector.extract_strided_slice %20 {offsets = [0, 32], sizes = [40, 32], strides = [1, 1]} : vector<40x128xf32> to vector<40x32xf32>
    %48 = vector.extract_strided_slice %27 {offsets = [0, 32], sizes = [40, 32], strides = [1, 1]} : vector<40x128xf32> to vector<40x32xf32>
    %cst_30 = arith.constant dense<0.000000e+00> : vector<40x40xf32>
    %49 = tpu.matmul %46, %47, %cst_30 {dimension_numbers = #tpu.dot_dimension_numbers<[1], [1], [0], [0], [0, 0, 1, 0], [], []>} : vector<40x32xf32>, vector<40x32xf32>, vector<40x40xf32> -> vector<40x40xf32>
    %cst_31 = arith.constant 0.176776692 : f32
    %50 = vector.broadcast %cst_31 : f32 to vector<40x40xf32>
    %51 = arith.mulf %49, %50 : vector<40x40xf32>
    %52 = arith.addf %51, %5 : vector<40x40xf32>
    %cst_32 = arith.constant dense<0xFF800000> : vector<40xf32>
    %53 = vector.multi_reduction <maximumf>, %52, %cst_32 [1] : vector<40x40xf32> to vector<40xf32>
    %54 = vector.shape_cast %53 : vector<40xf32> to vector<40x1xf32>
    %55 = vector.broadcast %54 : vector<40x1xf32> to vector<40x40xf32>
    %56 = arith.subf %52, %55 : vector<40x40xf32>
    %57 = math.exp %56 : vector<40x40xf32>
    %cst_33 = arith.constant dense<0.000000e+00> : vector<40xf32>
    %58 = vector.multi_reduction <add>, %57, %cst_33 [1] : vector<40x40xf32> to vector<40xf32>
    %59 = vector.shape_cast %58 : vector<40xf32> to vector<40x1xf32>
    %60 = tpu.reciprocal %59 {approx = true} : vector<40x1xf32> -> vector<40x1xf32>
    %61 = vector.broadcast %60 : vector<40x1xf32> to vector<40x40xf32>
    %62 = arith.mulf %57, %61 : vector<40x40xf32>
    %cst_34 = arith.constant dense<0.000000e+00> : vector<40x32xf32>
    %63 = tpu.matmul %62, %48, %cst_34 {dimension_numbers = #tpu.dot_dimension_numbers<[1], [0], [0], [1], [0, 0, 1, 1], [], []>} : vector<40x40xf32>, vector<40x32xf32>, vector<40x32xf32> -> vector<40x32xf32>
    %64 = vector.extract_strided_slice %13 {offsets = [0, 64], sizes = [40, 32], strides = [1, 1]} : vector<40x128xf32> to vector<40x32xf32>
    %65 = vector.extract_strided_slice %20 {offsets = [0, 64], sizes = [40, 32], strides = [1, 1]} : vector<40x128xf32> to vector<40x32xf32>
    %66 = vector.extract_strided_slice %27 {offsets = [0, 64], sizes = [40, 32], strides = [1, 1]} : vector<40x128xf32> to vector<40x32xf32>
    %cst_35 = arith.constant dense<0.000000e+00> : vector<40x40xf32>
    %67 = tpu.matmul %64, %65, %cst_35 {dimension_numbers = #tpu.dot_dimension_numbers<[1], [1], [0], [0], [0, 0, 1, 0], [], []>} : vector<40x32xf32>, vector<40x32xf32>, vector<40x40xf32> -> vector<40x40xf32>
    %cst_36 = arith.constant 0.176776692 : f32
    %68 = vector.broadcast %cst_36 : f32 to vector<40x40xf32>
    %69 = arith.mulf %67, %68 : vector<40x40xf32>
    %70 = arith.addf %69, %5 : vector<40x40xf32>
    %cst_37 = arith.constant dense<0xFF800000> : vector<40xf32>
    %71 = vector.multi_reduction <maximumf>, %70, %cst_37 [1] : vector<40x40xf32> to vector<40xf32>
    %72 = vector.shape_cast %71 : vector<40xf32> to vector<40x1xf32>
    %73 = vector.broadcast %72 : vector<40x1xf32> to vector<40x40xf32>
    %74 = arith.subf %70, %73 : vector<40x40xf32>
    %75 = math.exp %74 : vector<40x40xf32>
    %cst_38 = arith.constant dense<0.000000e+00> : vector<40xf32>
    %76 = vector.multi_reduction <add>, %75, %cst_38 [1] : vector<40x40xf32> to vector<40xf32>
    %77 = vector.shape_cast %76 : vector<40xf32> to vector<40x1xf32>
    %78 = tpu.reciprocal %77 {approx = true} : vector<40x1xf32> -> vector<40x1xf32>
    %79 = vector.broadcast %78 : vector<40x1xf32> to vector<40x40xf32>
    %80 = arith.mulf %75, %79 : vector<40x40xf32>
    %cst_39 = arith.constant dense<0.000000e+00> : vector<40x32xf32>
    %81 = tpu.matmul %80, %66, %cst_39 {dimension_numbers = #tpu.dot_dimension_numbers<[1], [0], [0], [1], [0, 0, 1, 1], [], []>} : vector<40x40xf32>, vector<40x32xf32>, vector<40x32xf32> -> vector<40x32xf32>
    %82 = vector.extract_strided_slice %13 {offsets = [0, 96], sizes = [40, 32], strides = [1, 1]} : vector<40x128xf32> to vector<40x32xf32>
    %83 = vector.extract_strided_slice %20 {offsets = [0, 96], sizes = [40, 32], strides = [1, 1]} : vector<40x128xf32> to vector<40x32xf32>
    %84 = vector.extract_strided_slice %27 {offsets = [0, 96], sizes = [40, 32], strides = [1, 1]} : vector<40x128xf32> to vector<40x32xf32>
    %cst_40 = arith.constant dense<0.000000e+00> : vector<40x40xf32>
    %85 = tpu.matmul %82, %83, %cst_40 {dimension_numbers = #tpu.dot_dimension_numbers<[1], [1], [0], [0], [0, 0, 1, 0], [], []>} : vector<40x32xf32>, vector<40x32xf32>, vector<40x40xf32> -> vector<40x40xf32>
    %cst_41 = arith.constant 0.176776692 : f32
    %86 = vector.broadcast %cst_41 : f32 to vector<40x40xf32>
    %87 = arith.mulf %85, %86 : vector<40x40xf32>
    %88 = arith.addf %87, %5 : vector<40x40xf32>
    %cst_42 = arith.constant dense<0xFF800000> : vector<40xf32>
    %89 = vector.multi_reduction <maximumf>, %88, %cst_42 [1] : vector<40x40xf32> to vector<40xf32>
    %90 = vector.shape_cast %89 : vector<40xf32> to vector<40x1xf32>
    %91 = vector.broadcast %90 : vector<40x1xf32> to vector<40x40xf32>
    %92 = arith.subf %88, %91 : vector<40x40xf32>
    %93 = math.exp %92 : vector<40x40xf32>
    %cst_43 = arith.constant dense<0.000000e+00> : vector<40xf32>
    %94 = vector.multi_reduction <add>, %93, %cst_43 [1] : vector<40x40xf32> to vector<40xf32>
    %95 = vector.shape_cast %94 : vector<40xf32> to vector<40x1xf32>
    %96 = tpu.reciprocal %95 {approx = true} : vector<40x1xf32> -> vector<40x1xf32>
    %97 = vector.broadcast %96 : vector<40x1xf32> to vector<40x40xf32>
    %98 = arith.mulf %93, %97 : vector<40x40xf32>
    %cst_44 = arith.constant dense<0.000000e+00> : vector<40x32xf32>
    %99 = tpu.matmul %98, %84, %cst_44 {dimension_numbers = #tpu.dot_dimension_numbers<[1], [0], [0], [1], [0, 0, 1, 1], [], []>} : vector<40x40xf32>, vector<40x32xf32>, vector<40x32xf32> -> vector<40x32xf32>
    %100 = tpu.concatenate %45, %63, %81, %99 in 1 : vector<40x32xf32>, vector<40x32xf32>, vector<40x32xf32>, vector<40x32xf32> -> vector<40x128xf32>
    %101 = arith.truncf %100 : vector<40x128xf32> to vector<40x128xbf16>
    %c0_45 = arith.constant 0 : index
    %c0_46 = arith.constant 0 : index
    %c0_47 = arith.constant 0 : index
    %102 = vector.load %arg10[%c0_45, %c0_46, %c0_47] : memref<1x128x128xbf16, #tpu.memory_space<vmem>>, vector<1x128x128xbf16>
    %103 = vector.shape_cast %102 : vector<1x128x128xbf16> to vector<128x128xbf16>
    %cst_48 = arith.constant dense<0.000000e+00> : vector<40x128xf32>
    %104 = tpu.matmul %101, %103, %cst_48 {dimension_numbers = #tpu.dot_dimension_numbers<[1], [0], [0], [1], [0, 0, 1, 1], [], []>} : vector<40x128xbf16>, vector<128x128xbf16>, vector<40x128xf32> -> vector<40x128xf32>
    %c0_49 = arith.constant 0 : index
    %c0_50 = arith.constant 0 : index
    %c0_51 = arith.constant 0 : index
    %105 = vector.load %arg11[%c0_49, %c0_50, %c0_51] : memref<1x1x128xf32, #tpu.memory_space<vmem>>, vector<1x1x128xf32>
    %106 = vector.shape_cast %105 : vector<1x1x128xf32> to vector<1x128xf32>
    %107 = vector.broadcast %106 : vector<1x128xf32> to vector<40x128xf32>
    %108 = arith.addf %104, %107 : vector<40x128xf32>
    %109 = arith.addf %3, %108 : vector<40x128xf32>
    %c0_52 = arith.constant 0 : index
    %c0_53 = arith.constant 0 : index
    %c0_54 = arith.constant 0 : index
    %110 = vector.load %arg12[%c0_52, %c0_53, %c0_54] : memref<1x1x128xf32, #tpu.memory_space<vmem>>, vector<1x1x128xf32>
    %111 = vector.shape_cast %110 : vector<1x1x128xf32> to vector<1x128xf32>
    %c0_55 = arith.constant 0 : index
    %c0_56 = arith.constant 0 : index
    %c0_57 = arith.constant 0 : index
    %112 = vector.load %arg13[%c0_55, %c0_56, %c0_57] : memref<1x1x128xf32, #tpu.memory_space<vmem>>, vector<1x1x128xf32>
    %113 = vector.shape_cast %112 : vector<1x1x128xf32> to vector<1x128xf32>
    %cst_58 = arith.constant dense<0.000000e+00> : vector<40xf32>
    %114 = vector.multi_reduction <add>, %109, %cst_58 [1] : vector<40x128xf32> to vector<40xf32>
    %115 = vector.shape_cast %114 : vector<40xf32> to vector<40x1xf32>
    %cst_59 = arith.constant 1.280000e+02 : f32
    %116 = vector.broadcast %cst_59 : f32 to vector<40x1xf32>
    %117 = arith.divf %115, %116 : vector<40x1xf32>
    %118 = vector.broadcast %117 : vector<40x1xf32> to vector<40x128xf32>
    %119 = arith.subf %109, %118 : vector<40x128xf32>
    %120 = arith.mulf %119, %119 : vector<40x128xf32>
    %cst_60 = arith.constant dense<0.000000e+00> : vector<40xf32>
    %121 = vector.multi_reduction <add>, %120, %cst_60 [1] : vector<40x128xf32> to vector<40xf32>
    %122 = vector.shape_cast %121 : vector<40xf32> to vector<40x1xf32>
    %cst_61 = arith.constant 1.280000e+02 : f32
    %123 = vector.broadcast %cst_61 : f32 to vector<40x1xf32>
    %124 = arith.divf %122, %123 : vector<40x1xf32>
    %125 = vector.broadcast %117 : vector<40x1xf32> to vector<40x128xf32>
    %126 = arith.subf %109, %125 : vector<40x128xf32>
    %cst_62 = arith.constant 9.99999974E-6 : f32
    %127 = vector.broadcast %cst_62 : f32 to vector<40x1xf32>
    %128 = arith.addf %124, %127 : vector<40x1xf32>
    %129 = math.rsqrt %128 : vector<40x1xf32>
    %130 = vector.broadcast %129 : vector<40x1xf32> to vector<40x128xf32>
    %131 = arith.mulf %126, %130 : vector<40x128xf32>
    %132 = vector.broadcast %111 : vector<1x128xf32> to vector<40x128xf32>
    %133 = arith.mulf %131, %132 : vector<40x128xf32>
    %134 = vector.broadcast %113 : vector<1x128xf32> to vector<40x128xf32>
    %135 = arith.addf %133, %134 : vector<40x128xf32>
    %136 = arith.truncf %135 : vector<40x128xf32> to vector<40x128xbf16>
    %c0_63 = arith.constant 0 : index
    %c0_64 = arith.constant 0 : index
    %c0_65 = arith.constant 0 : index
    %137 = vector.load %arg14[%c0_63, %c0_64, %c0_65] : memref<1x128x256xbf16, #tpu.memory_space<vmem>>, vector<1x128x256xbf16>
    %138 = vector.shape_cast %137 : vector<1x128x256xbf16> to vector<128x256xbf16>
    %cst_66 = arith.constant dense<0.000000e+00> : vector<40x256xf32>
    %139 = tpu.matmul %136, %138, %cst_66 {dimension_numbers = #tpu.dot_dimension_numbers<[1], [0], [0], [1], [0, 0, 1, 1], [], []>} : vector<40x128xbf16>, vector<128x256xbf16>, vector<40x256xf32> -> vector<40x256xf32>
    %c0_67 = arith.constant 0 : index
    %c0_68 = arith.constant 0 : index
    %c0_69 = arith.constant 0 : index
    %140 = vector.load %arg15[%c0_67, %c0_68, %c0_69] : memref<1x1x256xf32, #tpu.memory_space<vmem>>, vector<1x1x256xf32>
    %141 = vector.shape_cast %140 : vector<1x1x256xf32> to vector<1x256xf32>
    %142 = vector.broadcast %141 : vector<1x256xf32> to vector<40x256xf32>
    %143 = arith.addf %139, %142 : vector<40x256xf32>
    %144 = arith.mulf %143, %143 : vector<40x256xf32>
    %145 = arith.mulf %143, %144 : vector<40x256xf32>
    %cst_70 = arith.constant 4.471500e-02 : f32
    %146 = vector.broadcast %cst_70 : f32 to vector<40x256xf32>
    %147 = arith.mulf %146, %145 : vector<40x256xf32>
    %148 = arith.addf %143, %147 : vector<40x256xf32>
    %cst_71 = arith.constant 0.797884583 : f32
    %149 = vector.broadcast %cst_71 : f32 to vector<40x256xf32>
    %150 = arith.mulf %149, %148 : vector<40x256xf32>
    %151 = math.tanh %150 : vector<40x256xf32>
    %cst_72 = arith.constant 1.000000e+00 : f32
    %152 = vector.broadcast %cst_72 : f32 to vector<40x256xf32>
    %153 = arith.addf %152, %151 : vector<40x256xf32>
    %cst_73 = arith.constant 5.000000e-01 : f32
    %154 = vector.broadcast %cst_73 : f32 to vector<40x256xf32>
    %155 = arith.mulf %154, %153 : vector<40x256xf32>
    %156 = arith.mulf %143, %155 : vector<40x256xf32>
    %157 = arith.truncf %156 : vector<40x256xf32> to vector<40x256xbf16>
    %c0_74 = arith.constant 0 : index
    %c0_75 = arith.constant 0 : index
    %c0_76 = arith.constant 0 : index
    %158 = vector.load %arg16[%c0_74, %c0_75, %c0_76] : memref<1x256x128xbf16, #tpu.memory_space<vmem>>, vector<1x256x128xbf16>
    %159 = vector.shape_cast %158 : vector<1x256x128xbf16> to vector<256x128xbf16>
    %cst_77 = arith.constant dense<0.000000e+00> : vector<40x128xf32>
    %160 = tpu.matmul %157, %159, %cst_77 {dimension_numbers = #tpu.dot_dimension_numbers<[1], [0], [0], [1], [0, 0, 1, 1], [], []>} : vector<40x256xbf16>, vector<256x128xbf16>, vector<40x128xf32> -> vector<40x128xf32>
    %c0_78 = arith.constant 0 : index
    %c0_79 = arith.constant 0 : index
    %c0_80 = arith.constant 0 : index
    %161 = vector.load %arg17[%c0_78, %c0_79, %c0_80] : memref<1x1x128xf32, #tpu.memory_space<vmem>>, vector<1x1x128xf32>
    %162 = vector.shape_cast %161 : vector<1x1x128xf32> to vector<1x128xf32>
    %163 = vector.broadcast %162 : vector<1x128xf32> to vector<40x128xf32>
    %164 = arith.addf %160, %163 : vector<40x128xf32>
    %165 = arith.addf %135, %164 : vector<40x128xf32>
    %c0_81 = arith.constant 0 : index
    %c0_82 = arith.constant 0 : index
    %c0_83 = arith.constant 0 : index
    %166 = vector.load %arg18[%c0_81, %c0_82, %c0_83] : memref<1x1x128xf32, #tpu.memory_space<vmem>>, vector<1x1x128xf32>
    %167 = vector.shape_cast %166 : vector<1x1x128xf32> to vector<1x128xf32>
    %c0_84 = arith.constant 0 : index
    %c0_85 = arith.constant 0 : index
    %c0_86 = arith.constant 0 : index
    %168 = vector.load %arg19[%c0_84, %c0_85, %c0_86] : memref<1x1x128xf32, #tpu.memory_space<vmem>>, vector<1x1x128xf32>
    %169 = vector.shape_cast %168 : vector<1x1x128xf32> to vector<1x128xf32>
    %cst_87 = arith.constant dense<0.000000e+00> : vector<40xf32>
    %170 = vector.multi_reduction <add>, %165, %cst_87 [1] : vector<40x128xf32> to vector<40xf32>
    %171 = vector.shape_cast %170 : vector<40xf32> to vector<40x1xf32>
    %cst_88 = arith.constant 1.280000e+02 : f32
    %172 = vector.broadcast %cst_88 : f32 to vector<40x1xf32>
    %173 = arith.divf %171, %172 : vector<40x1xf32>
    %174 = vector.broadcast %173 : vector<40x1xf32> to vector<40x128xf32>
    %175 = arith.subf %165, %174 : vector<40x128xf32>
    %176 = arith.mulf %175, %175 : vector<40x128xf32>
    %cst_89 = arith.constant dense<0.000000e+00> : vector<40xf32>
    %177 = vector.multi_reduction <add>, %176, %cst_89 [1] : vector<40x128xf32> to vector<40xf32>
    %178 = vector.shape_cast %177 : vector<40xf32> to vector<40x1xf32>
    %cst_90 = arith.constant 1.280000e+02 : f32
    %179 = vector.broadcast %cst_90 : f32 to vector<40x1xf32>
    %180 = arith.divf %178, %179 : vector<40x1xf32>
    %181 = vector.broadcast %173 : vector<40x1xf32> to vector<40x128xf32>
    %182 = arith.subf %165, %181 : vector<40x128xf32>
    %cst_91 = arith.constant 9.99999974E-6 : f32
    %183 = vector.broadcast %cst_91 : f32 to vector<40x1xf32>
    %184 = arith.addf %180, %183 : vector<40x1xf32>
    %185 = math.rsqrt %184 : vector<40x1xf32>
    %186 = vector.broadcast %185 : vector<40x1xf32> to vector<40x128xf32>
    %187 = arith.mulf %182, %186 : vector<40x128xf32>
    %188 = vector.broadcast %167 : vector<1x128xf32> to vector<40x128xf32>
    %189 = arith.mulf %187, %188 : vector<40x128xf32>
    %190 = vector.broadcast %169 : vector<1x128xf32> to vector<40x128xf32>
    %191 = arith.addf %189, %190 : vector<40x128xf32>
    %c0_92 = arith.constant 0 : index
    %c0_93 = arith.constant 0 : index
    %192 = vector.load %arg23[%c0_92, %c0_93] : memref<40x128xf32, #tpu.memory_space<vmem>>, vector<40x128xf32>
    tpu.vector_store %arg23[%c0_92, %c0_93], %191 {strides = array<i32>} : memref<40x128xf32, #tpu.memory_space<vmem>>, vector<40x128xf32>,
    %c1_i32 = arith.constant 1 : i32
    %193 = arith.cmpi eq, %arg1, %c1_i32 : i32
    %194 = arith.extui %193 : i1 to i32
    %c0_i32_94 = arith.constant 0 : i32
    %195 = arith.cmpi ne, %194, %c0_i32_94 : i32
    scf.if %195 {
      %196 = vector.shape_cast %191 : vector<40x128xf32> to vector<5x8x128xf32>
      %197 = vector.extract_strided_slice %196 {offsets = [0, 0, 0], sizes = [5, 1, 128], strides = [1, 1, 1]} : vector<5x8x128xf32> to vector<5x1x128xf32>
      %198 = vector.shape_cast %197 : vector<5x1x128xf32> to vector<5x128xf32>
      %199 = arith.truncf %198 : vector<5x128xf32> to vector<5x128xbf16>
      %c0_95 = arith.constant 0 : index
      %c0_96 = arith.constant 0 : index
      %200 = vector.load %arg20[%c0_95, %c0_96] : memref<128x128xbf16, #tpu.memory_space<vmem>>, vector<128x128xbf16>
      %cst_97 = arith.constant dense<0.000000e+00> : vector<5x128xf32>
      %201 = tpu.matmul %199, %200, %cst_97 {dimension_numbers = #tpu.dot_dimension_numbers<[1], [0], [0], [1], [0, 0, 1, 1], [], []>} : vector<5x128xbf16>, vector<128x128xbf16>, vector<5x128xf32> -> vector<5x128xf32>
      %c0_98 = arith.constant 0 : index
      %c0_99 = arith.constant 0 : index
      %202 = vector.load %arg21[%c0_98, %c0_99] : memref<1x128xf32, #tpu.memory_space<vmem>>, vector<1x128xf32>
      %203 = vector.broadcast %202 : vector<1x128xf32> to vector<5x128xf32>
      %204 = arith.addf %201, %203 : vector<5x128xf32>
      %205 = math.tanh %204 : vector<5x128xf32>
      %c0_100 = arith.constant 0 : index
      %c0_101 = arith.constant 0 : index
      %c0_102 = arith.constant 0 : index
      %206 = vector.load %arg22[%c0_100, %c0_101, %c0_102] : memref<1x5x128xf32, #tpu.memory_space<vmem>>, vector<1x5x128xf32>
      %207 = vector.shape_cast %206 : vector<1x5x128xf32> to vector<5x128xf32>
      %208 = vector.shape_cast %205 : vector<5x128xf32> to vector<1x5x128xf32>
      tpu.vector_store %arg22[%c0_100, %c0_101, %c0_102], %208 {strides = array<i32>} : memref<1x5x128xf32, #tpu.memory_space<vmem>>, vector<1x5x128xf32>,
    } else {
    }
    return
  }
  func.func @transform_0(%arg0: i32, %arg1: i32) -> (i32, i32, i32) {
    %c0_i32 = arith.constant 0 : i32
    %c0_i32_0 = arith.constant 0 : i32
    %c0_i32_1 = arith.constant 0 : i32
    return %arg0, %c0_i32, %c0_i32_0 : i32, i32, i32
  }
  func.func @transform_1(%arg0: i32, %arg1: i32) -> (i32, i32, i32) {
    %c0_i32 = arith.constant 0 : i32
    %c0_i32_0 = arith.constant 0 : i32
    %c0_i32_1 = arith.constant 0 : i32
    return %arg0, %c0_i32, %c0_i32_0 : i32, i32, i32
  }
  func.func @transform_2(%arg0: i32, %arg1: i32) -> (i32, i32, i32) {
    %c0_i32 = arith.constant 0 : i32
    %c0_i32_0 = arith.constant 0 : i32
    %c0_i32_1 = arith.constant 0 : i32
    return %arg1, %c0_i32, %c0_i32_0 : i32, i32, i32
  }
  func.func @transform_3(%arg0: i32, %arg1: i32) -> (i32, i32, i32) {
    %c0_i32 = arith.constant 0 : i32
    %c0_i32_0 = arith.constant 0 : i32
    %c0_i32_1 = arith.constant 0 : i32
    return %arg1, %c0_i32, %c0_i32_0 : i32, i32, i32
  }
  func.func @transform_4(%arg0: i32, %arg1: i32) -> (i32, i32, i32) {
    %c0_i32 = arith.constant 0 : i32
    %c0_i32_0 = arith.constant 0 : i32
    %c0_i32_1 = arith.constant 0 : i32
    return %arg1, %c0_i32, %c0_i32_0 : i32, i32, i32
  }
  func.func @transform_5(%arg0: i32, %arg1: i32) -> (i32, i32, i32) {
    %c0_i32 = arith.constant 0 : i32
    %c0_i32_0 = arith.constant 0 : i32
    %c0_i32_1 = arith.constant 0 : i32
    return %arg1, %c0_i32, %c0_i32_0 : i32, i32, i32
  }
  func.func @transform_6(%arg0: i32, %arg1: i32) -> (i32, i32, i32) {
    %c0_i32 = arith.constant 0 : i32
    %c0_i32_0 = arith.constant 0 : i32
    %c0_i32_1 = arith.constant 0 : i32
    return %arg1, %c0_i32, %c0_i32_0 : i32, i32, i32
  }
  func.func @transform_7(%arg0: i32, %arg1: i32) -> (i32, i32, i32) {
    %c0_i32 = arith.constant 0 : i32
    %c0_i32_0 = arith.constant 0 : i32
    %c0_i32_1 = arith.constant 0 : i32
    return %arg1, %c0_i32, %c0_i32_0 : i32, i32, i32
  }
  func.func @transform_8(%arg0: i32, %arg1: i32) -> (i32, i32, i32) {
    %c0_i32 = arith.constant 0 : i32
    %c0_i32_0 = arith.constant 0 : i32
    %c0_i32_1 = arith.constant 0 : i32
    return %arg1, %c0_i32, %c0_i32_0 : i32, i32, i32
  }
  func.func @transform_9(%arg0: i32, %arg1: i32) -> (i32, i32, i32) {
    %c0_i32 = arith.constant 0 : i32
    %c0_i32_0 = arith.constant 0 : i32
    %c0_i32_1 = arith.constant 0 : i32
    return %arg1, %c0_i32, %c0_i32_0 : i32, i32, i32
  }
  func.func @transform_10(%arg0: i32, %arg1: i32) -> (i32, i32, i32) {
    %c0_i32 = arith.constant 0 : i32
    %c0_i32_0 = arith.constant 0 : i32
    %c0_i32_1 = arith.constant 0 : i32
    return %arg1, %c0_i32, %c0_i32_0 : i32, i32, i32
  }
  func.func @transform_11(%arg0: i32, %arg1: i32) -> (i32, i32, i32) {
    %c0_i32 = arith.constant 0 : i32
    %c0_i32_0 = arith.constant 0 : i32
    %c0_i32_1 = arith.constant 0 : i32
    return %arg1, %c0_i32, %c0_i32_0 : i32, i32, i32
  }
  func.func @transform_12(%arg0: i32, %arg1: i32) -> (i32, i32, i32) {
    %c0_i32 = arith.constant 0 : i32
    %c0_i32_0 = arith.constant 0 : i32
    %c0_i32_1 = arith.constant 0 : i32
    return %arg1, %c0_i32, %c0_i32_0 : i32, i32, i32
  }
  func.func @transform_13(%arg0: i32, %arg1: i32) -> (i32, i32, i32) {
    %c0_i32 = arith.constant 0 : i32
    %c0_i32_0 = arith.constant 0 : i32
    %c0_i32_1 = arith.constant 0 : i32
    return %arg1, %c0_i32, %c0_i32_0 : i32, i32, i32
  }
  func.func @transform_14(%arg0: i32, %arg1: i32) -> (i32, i32, i32) {
    %c0_i32 = arith.constant 0 : i32
    %c0_i32_0 = arith.constant 0 : i32
    %c0_i32_1 = arith.constant 0 : i32
    return %arg1, %c0_i32, %c0_i32_0 : i32, i32, i32
  }
  func.func @transform_15(%arg0: i32, %arg1: i32) -> (i32, i32, i32) {
    %c0_i32 = arith.constant 0 : i32
    %c0_i32_0 = arith.constant 0 : i32
    %c0_i32_1 = arith.constant 0 : i32
    return %arg1, %c0_i32, %c0_i32_0 : i32, i32, i32
  }
  func.func @transform_16(%arg0: i32, %arg1: i32) -> (i32, i32, i32) {
    %c0_i32 = arith.constant 0 : i32
    %c0_i32_0 = arith.constant 0 : i32
    %c0_i32_1 = arith.constant 0 : i32
    return %arg1, %c0_i32, %c0_i32_0 : i32, i32, i32
  }
  func.func @transform_17(%arg0: i32, %arg1: i32) -> (i32, i32, i32) {
    %c0_i32 = arith.constant 0 : i32
    %c0_i32_0 = arith.constant 0 : i32
    %c0_i32_1 = arith.constant 0 : i32
    return %arg1, %c0_i32, %c0_i32_0 : i32, i32, i32
  }
  func.func @transform_18(%arg0: i32, %arg1: i32) -> (i32, i32) {
    %c0_i32 = arith.constant 0 : i32
    %c0_i32_0 = arith.constant 0 : i32
    %c0_i32_1 = arith.constant 0 : i32
    return %c0_i32, %c0_i32_0 : i32, i32
  }
  func.func @transform_19(%arg0: i32, %arg1: i32) -> (i32, i32) {
    %c0_i32 = arith.constant 0 : i32
    %c0_i32_0 = arith.constant 0 : i32
    %c0_i32_1 = arith.constant 0 : i32
    return %c0_i32, %c0_i32_0 : i32, i32
  }
  func.func @transform_20(%arg0: i32, %arg1: i32) -> (i32, i32, i32) {
    %c0_i32 = arith.constant 0 : i32
    %c0_i32_0 = arith.constant 0 : i32
    %c0_i32_1 = arith.constant 0 : i32
    return %arg0, %c0_i32, %c0_i32_0 : i32, i32, i32
  }
}

</mosaic_0001>

<bundles_post_ra>
// kernel: codebert_forward.1
= control target key start
LH: loop header
LB: loop body
LE: loop exit
PB: predicated region body
PF: predicated region fallthrough
CT: control target
= control target key end

     0   :  { %s4945_s22 = smov 0   ;;  %s4947_s23 = smov 0   ;;  %s5974_s0 = inlined_call_operand.vmem [shape: bf16[2,40,128], index: 0, kind: input, shape index: {}]   ;;  %s5975_s1 = inlined_call_operand.vmem [shape: f32[2,40,40], index: 1, kind: input, shape index: {}]   ;;  %s5976_s2 = inlined_call_operand.vmem [shape: bf16[2,128,128], index: 2, kind: input, shape index: {}]   ;;  %s5977_s3 = inlined_call_operand.vmem [shape: f32[2,1,128], index: 3, kind: input, shape index: {}, may-alias: {3,5,7,9,11,15,17}]   ;;  %s5978_s4 = inlined_call_operand.vmem [shape: bf16[2,128,128], index: 4, kind: input, shape index: {}]   ;;  %s5979_s5 = inlined_call_operand.vmem [shape: f32[2,1,128], index: 5, kind: input, shape index: {}, may-alias: {3,5,7,9,11,15,17}]   ;;  %s5980_s6 = inlined_call_operand.vmem [shape: bf16[2,128,128], index: 6, kind: input, shape index: {}]   ;;  %s5981_s7 = inlined_call_operand.vmem [shape: f32[2,1,128], index: 7, kind: input, shape index: {}, may-alias: {3,5,7,9,11,15,17}]   ;;  %s5982_s8 = inlined_call_operand.vmem [shape: bf16[2,128,128], index: 8, kind: input, shape index: {}]   ;;  %s5983_s9 = inlined_call_operand.vmem [shape: f32[2,1,128], index: 9, kind: input, shape index: {}, may-alias: {3,5,7,9,11,15,17}]   ;;  %s5984_s10 = inlined_call_operand.vmem [shape: f32[2,1,128], index: 10, kind: input, shape index: {}, may-alias: {10,16}]   ;;  %s5985_s11 = inlined_call_operand.vmem [shape: f32[2,1,128], index: 11, kind: input, shape index: {}, may-alias: {3,5,7,9,11,15,17}]   ;;  %s5986_s12 = inlined_call_operand.vmem [shape: bf16[2,128,256], index: 12, kind: input, shape index: {}]   ;;  %s5987_s13 = inlined_call_operand.vmem [shape: f32[2,1,256], index: 13, kind: input, shape index: {}]   ;;  %s5988_s14 = inlined_call_operand.vmem [shape: bf16[2,256,128], index: 14, kind: input, shape index: {}]   ;;  %s5989_s15 = inlined_call_operand.vmem [shape: f32[2,1,128], index: 15, kind: input, shape index: {}, may-alias: {3,5,7,9,11,15,17}]   ;;  %s5990_s16 = inlined_call_operand.vmem [shape: f32[2,1,128], index: 16, kind: input, shape index: {}, may-alias: {10,16}]   ;;  %s5991_s17 = inlined_call_operand.vmem [shape: f32[2,1,128], index: 17, kind: input, shape index: {}, may-alias: {3,5,7,9,11,15,17}]   ;;  %s5992_s18 = inlined_call_operand.vmem [shape: bf16[128,128], index: 18, kind: input, shape index: {}]   ;;  %s5993_s19 = inlined_call_operand.vmem [shape: f32[1,128], index: 19, kind: input, shape index: {}]   ;;  %s5994_s20 = inlined_call_operand.vmem [shape: f32[2,5,128], index: 20, kind: output, shape index: {}]  }
   0x1   :  { %6002 = sst [smem:[#allocation11_spill]] %s5974_s0  ;;  %s4949_s24 = smov 0  }
   0x2   :  { %6003 = sst [smem:[#allocation12_spill]] %s5975_s1  ;;  %s4943_s1 = smov 0  }
   0x3   :  { %6004 = sst [smem:[#allocation13_spill]] %s5976_s2  ;;  %s4951_s2 = smov 0  }
   0x4   :  { %6005 = sst [smem:[#allocation14_spill]] %s5977_s3 }
   0x5   :  { %6006 = sst [smem:[#allocation15_spill]] %s5978_s4 }
   0x6   :  { %6007 = sst [smem:[#allocation16_spill]] %s5980_s6 }
   0x7   :  { %6008 = sst [smem:[#allocation17_spill]] %s5982_s8 }
   0x8   :  { %6009 = sst [smem:[#allocation18_spill]] %s5983_s9 }
   0x9   :  { %6010 = sst [smem:[#allocation19_spill]] %s5984_s10 }
   0xa   :  { %6011 = sst [smem:[#allocation20_spill]] %s5985_s11 }
   0xb   :  { %6012 = sst [smem:[#allocation21_spill]] %s5986_s12 }
   0xc   :  { %6013 = sst [smem:[#allocation22_spill]] %s5987_s13 }
   0xd   :  { %6014 = sst [smem:[#allocation23_spill]] %s5988_s14 }
   0xe   :  { %6015 = sst [smem:[#allocation24_spill]] %s5989_s15 }
   0xf   :  { %6016 = sst [smem:[#allocation25_spill]] %s5990_s16 }
  0x10   :  { %6017 = sst [smem:[#allocation26_spill]] %s5991_s17 }
  0x11   :  { %6018 = sst [smem:[#allocation27_spill]] %s5992_s18 }
  0x12   :  { %6019 = sst [smem:[#allocation28_spill]] %s5993_s19 }
  0x13   :  { %6020 = sst [smem:[#allocation29_spill]] %s5994_s20 }
  0x14 LB: > { %6021 = sst [smem:[#allocation3_spill]] %s4812_s1  ;;  %s39_s25 = sadd.s32 1, %s4820_s23  ;;  %s4828_s2 = sphi %s4951_s2, %s30_s2   ;;  %s4824_s24 = sphi %s4949_s24, %s6069_s24   ;;  %s4820_s23 = sphi %s4947_s23, %s6068_s23   ;;  %s4816_s22 = sphi %s4945_s22, %s6067_s22   ;;  %s4812_s1 = sphi %s4943_s1, %s6066_s1  }
  0x15   : > { %6022 = sst [smem:[#allocation4_spill]] %s4820_s23  ;;  %s42_s3 = sadd.s32 1, %s4824_s24 }
  0x16   : > { %6023 = sst [smem:[#allocation5_spill]] %s4824_s24  ;;  %p40_p0 = scmp.ge.s32.totalorder %s39_s25, 2 }
  0x17   : > { %6024 = sst [smem:[#allocation6_spill]] %s4828_s2  ;;  %p3810_p1 = scmp.ge.s32.totalorder %s4828_s2, 1 }
  0x18   : > { %p725_p2 = scmp.lt.s32.totalorder %s4828_s2, 5  ;;  %s6071_s25 = smov (%p40_p0, %s39_s25), 0 }
  0x19   : > { %6025 = sst [smem:[#allocation7_spill]] %s6071_s25  ;;  %s6073_s3 = smov (!%p40_p0, %s42_s3), %s4824_s24 }
  0x1a   : > { %p726_p3 = pnand %p3810_p1, %p725_p2  ;;  %p44_p4 = scmp.ge.s32.totalorder %s6073_s3, 2 }
  0x1c   : > { %s6075_s3 = smov (%p44_p4, %s6073_s3), 0  ;;  %729 = sbr.rel (%p726_p3) target bundleno = 2890 (0xb4a), region = 100 }
  0x1d   : > { %6026 = sst [smem:[#allocation8_spill]] %s6075_s3 }
  0x21   : > { %p848_p5 = scmp.lt.s32.totalorder %s4816_s22, 1  ;;  %p858_p6 = scmp.lt.s32.totalorder %s4812_s1, 1 }
  0x22   : > { %s6027_s21 = sld [smem:[#allocation11_spill]] }
  0x23   : > { %s6077_s22 = smov (!%p848_p5, %s4816_s22), 1  ;;  %s6028_s23 = sld [smem:[#allocation13_spill]] }
  0x24   : > { %s4977_s26 = scalar_select %p858_p6, %s4812_s1, 1 }
  0x25   : > { %s4503_s27 = smul.u32 20, %s6077_s22  ;;  %s3826_s28 = sshll.u32 %s6077_s22, 3 }
  0x26   : > { %s4504_s4 = smul.u32 40, %s6077_s22  ;;  %s3973_s29 = sshll.u32 %s4977_s26, 6 }
  0x27   : > { %s6029_s1 = sld [smem:[#allocation12_spill]] }
  0x28   : > { %s852_s3 = scalar_lea.vmem %s6027_s21, %s4503_s27  ;;  %s6031_s30 = sld [smem:[#allocation15_spill]] }
  0x29   : > { %s4986_s2 = scalar_lea.vmem %s6028_s23, %s3973_s29  ;;  %s6032_s6 = sld [smem:[#allocation16_spill]] }
  0x2a   : > { %s6033_s8 = sld [smem:[#allocation17_spill]] }
  0x2b   : > { %s6038_s12 = sld [smem:[#allocation21_spill]] }
  0x2c   : > { %s6041_s24 = sld [smem:[#allocation23_spill]] }
  0x2d   : > { %s4991_s20 = scalar_lea.vmem %s6029_s1, %s4504_s4  ;;  %s3823_s1 = sshll.u32 %s4977_s26, 1 }
  0x2e   : > { %s5000_s27 = scalar_lea.vmem %s6031_s30, %s3973_s29  ;;  %s6042_s18 = sld [smem:[#allocation24_spill]] }
  0x2f   : > { %s5009_s19 = scalar_lea.vmem %s6032_s6, %s3973_s29  ;;  %s3977_s6 = sshll.u32 %s4977_s26, 7 }
  0x30   : > { %s5018_s13 = scalar_lea.vmem %s6033_s8, %s3973_s29  ;;  %s6040_s8 = sld [smem:[#allocation22_spill]] }
  0x31   : > { %6034 = sst [smem:[#allocation9_spill]] %s5018_s13  ;;  %s5037_s15 = scalar_lea.vmem %s6038_s12, %s3977_s6 }
  0x32   : > { %6039 = sst [smem:[#allocation10_spill]] %s5037_s15  ;;  %s5047_s23 = scalar_lea.vmem %s6041_s24, %s3977_s6 }
  0x33   : > { %s6043_s9 = sld [smem:[#allocation25_spill]] }
  0x34   : > { %s912_s25 = scalar_lea.vmem %s6042_s18, %s4977_s26  ;;  %s6044_s15 = sld [smem:[#allocation26_spill]] }
  0x35   : > { %s6046_s30 = sld [smem:[#allocation3_spill]] }
  0x36   : > { %s5042_s14 = scalar_lea.vmem %s6040_s8, %s3823_s1  ;;  %s6045_s1 = sld [smem:[#allocation29_spill]] }
  0x39   : > { %s915_s16 = scalar_lea.vmem %s6043_s9, %s4977_s26 }
  0x3a   : > { %s918_s13 = scalar_lea.vmem %s6044_s15, %s4977_s26 }
  0x3b   : > { %p3827_p7 = scmp.ne.s32.totalorder %s6046_s30, 0 }
  0x3c   : > { %s5064_s17 = scalar_lea.vmem %s6045_s1, %s3826_s28 }
  0x3d   : > { %927 = sbr.rel (%p3827_p7) target bundleno = 72 (0x48), region = 104 }
  0x42   : > { %v3980_v0 = vld [vmem:[%s852_s3] sm:$0xff]   ;;  %v3987_v1 = vld [vmem:[%s852_s3 + $0x8] sm:$0xff]   ;;  %v932_v2 = vld [vmem:[%s852_s3 + $0x10] sm:$0xf] }
  0x43   : > { %v3981_v3 = vunpack.c.l.bf16 %v3980_v0  ;;  %v3982_v4 = vunpack.c.h.bf16 %v3980_v0  ;;  %v3985_v5 = vunpack.c.l.bf16 %v3987_v1  ;;  %v3986_v6 = vunpack.c.h.bf16 %v3987_v1 }
  0x44   : > { %v937_v7 = vunpack.c.l.bf16 %v932_v2 }
  0x45   : > { %938 = vst [vmem:[#allocation2 + $0x8] sm:$0xff] %v3981_v3  ;;  %939 = vst [vmem:[#allocation2] sm:$0xff] %v3982_v4 }
  0x46   : > { %940 = vst [vmem:[#allocation2 + $0x20] sm:$0xff] %v3985_v5  ;;  %941 = vst [vmem:[#allocation2 + $0x10] sm:$0xff] %v3986_v6 }
  0x47   : > { %942 = vst [vmem:[#allocation2 + $0x18] sm:$0xff] %v937_v7 }
  0x48 PF: > { %v4583_v8 = vld [vmem:[%s5000_s27 + $0x38] sm:$0xff]   ;;  %v4830_v9 = vmov 0.0   ;;  %v4584_v10 = vld [vmem:[%s5000_s27 + $0x30] sm:$0xff]   ;;  %vm4831_vm0 = vmmov 0   ;;  %v4585_v12 = vld [vmem:[%s5000_s27 + $0x28] sm:$0xff]   ;;  %s6047_s10 = scalar_lea.vmem %s5979_s5, %s4977_s26  ;;  %s4832_s11 = smov 96  }
  0x49   : > { %4183 = vmatprep.subr.bf16.mxu1 %v4830_v9  ;;  %4155 = vmatprep.subr.bf16.mxu0 %v4830_v9  ;;  %v4587_v11 = vld [vmem:[%s4986_s2 + $0x38] sm:$0xff]   ;;  %v4589_v13 = vld [vmem:[%s4986_s2 + $0x30] sm:$0xff]   ;;  %v4586_v14 = vld [vmem:[%s5000_s27 + $0x20] sm:$0xff]   ;;  %s6048_s3 = sld [smem:[#allocation14_spill]]  ;;  %vm1337_vm1 = vcmask 261120   ;;  %s4833_s22 = smov 64  }
  0x4a   : > { %4184 = vmatpush3.bf16.msra.mxu1 %v4583_v8  ;;  %4199 = vmatprep.mubr.msk.bf16.mxu1 %vm4831_vm0, %v4830_v9  ;;  %v4591_v15 = vld [vmem:[%s4986_s2 + $0x28] sm:$0xff]   ;;  %v4588_v16 = vld [vmem:[%s5000_s27 + $0x18] sm:$0xff]   ;;  %v4593_v17 = vld [vmem:[%s4986_s2 + $0x20] sm:$0xff]   ;;  %s6050_s21 = scalar_lea.vmem %s5981_s7, %s4977_s26  ;;  %vm1468_vm2 = vcmask 326656   ;;  %vm2644_vm3 = vcmask 523264   ;;  %vm2650_vm4 = vcmask 785408  }
  0x4b   : > { %4185 = vmatprep.subr.bf16.mxu1 %v4830_v9  ;;  %4171 = vmatprep.mubr.msk.bf16.mxu0 %vm4831_vm0, %v4830_v9  ;;  %v4590_v18 = vld [vmem:[%s5000_s27 + $0x10] sm:$0xff]   ;;  %v4595_v19 = vld [vmem:[%s4986_s2 + $0x18] sm:$0xff]   ;;  %v4592_v20 = vld [vmem:[%s5000_s27 + $0x8] sm:$0xff]   ;;  %s6052_s18 = sld [smem:[#allocation18_spill]] }
  0x4c   : > { %4156 = vmatpush3.bf16.msra.mxu0 %v4587_v11  ;;  %v4596_v21 = vld [vmem:[%s4986_s2 + $0x10] sm:$0xff]   ;;  %v4594_v22 = vld [vmem:[%s5000_s27] sm:$0xff]   ;;  %v943_v23 = vld [vmem:[#allocation2 + $0x8] sm:$0xff]  ;;  %s4834_s27 = smov 32   ;;  %s6054_s29 = sld [smem:[#allocation10_spill]] }
  0x4d   : > { %4157 = vmatprep.subr.bf16.mxu0 %v4830_v9  ;;  %v944_v24 = vld [vmem:[#allocation2] sm:$0xff]  ;;  %v4597_v25 = vld [vmem:[%s4986_s2 + $0x8] sm:$0xff]   ;;  %v946_v29 = vld [vmem:[#allocation2 + $0x10] sm:$0xff]  ;;  %s6055_s30 = sld [smem:[#allocation19_spill]] }
  0x4e   : > { %4186 = vmatpush3.bf16.msra.mxu1 %v4584_v10  ;;  %v4598_v26 = vld [vmem:[%s4986_s2] sm:$0xff]   ;;  %v953_v27 = vpack.c.bf16 %v944_v24, %v943_v23  ;;  %v4599_v30 = vld [vmem:[%s5009_s19 + $0x38] sm:$0xff]   ;;  %v4600_v31 = vld [vmem:[%s5009_s19 + $0x30] sm:$0xff]  }
  0x4f   : > { %4187 = vmatprep.subr.bf16.mxu1 %v4830_v9  ;;  %v945_v28 = vld [vmem:[#allocation2 + $0x20] sm:$0xff]  ;;  %v947_v33 = vld [vmem:[#allocation2 + $0x18] sm:$0xff]  ;;  %v4601_v34 = vld [vmem:[%s5009_s19 + $0x28] sm:$0xff]   ;;  %s6049_s28 = scalar_lea.vmem %s6048_s3, %s4977_s26 }
  0x50   : > { %4158 = vmatpush3.bf16.msra.mxu0 %v4589_v13  ;;  %v954_v32 = vpack.c.bf16 %v946_v29, %v945_v28  ;;  %v4602_v35 = vld [vmem:[%s5009_s19 + $0x20] sm:$0xff]   ;;  %v955_v36 = vpack.c.bf16 %v947_v33, %v947_v33  ;;  %v4603_v37 = vld [vmem:[%s5009_s19 + $0x18] sm:$0xff]   ;;  %v4604_v38 = vld [vmem:[%s5009_s19 + $0x10] sm:$0xff]  }
  0x51   : > { %4159 = vmatprep.subr.bf16.mxu0 %v4830_v9  ;;  %v4605_v39 = vld [vmem:[%s5009_s19 + $0x8] sm:$0xff]   ;;  %v4606_v40 = vld [vmem:[%s5009_s19] sm:$0xff]   ;;  %s6053_s4 = scalar_lea.vmem %s6052_s18, %s4977_s26 }
  0x52   : > { %4188 = vmatpush3.bf16.msra.mxu1 %v4585_v12  ;;  %v3837_v47 = vld [vmem:[%s6047_s10] ss:$0 sm:$0xff] }
  0x53   : > { %4189 = vmatprep.subr.bf16.mxu1 %v4830_v9  ;;  %v3828_v56 = vld [vmem:[%s6049_s28] ss:$0 sm:$0xff]  ;;  %s6056_s6 = scalar_lea.vmem %s6055_s30, %s4977_s26 }
  0x54   : > { %4160 = vmatpush3.bf16.msra.mxu0 %v4591_v15 }
  0x55   : > { %4161 = vmatprep.subr.bf16.mxu0 %v4830_v9 }
  0x56   : > { %4190 = vmatpush3.bf16.msra.mxu1 %v4586_v14 }
  0x57   : > { %4191 = vmatprep.subr.bf16.mxu1 %v4830_v9 }
  0x58   : > { %4162 = vmatpush3.bf16.msra.mxu0 %v4593_v17 }
  0x59   : > { %4163 = vmatprep.subr.bf16.mxu0 %v4830_v9 }
  0x5a   : > { %4192 = vmatpush3.bf16.msra.mxu1 %v4588_v16 }
  0x5b   : > { %4193 = vmatprep.subr.bf16.mxu1 %v4830_v9 }
  0x5c   : > { %4164 = vmatpush3.bf16.msra.mxu0 %v4595_v19 }
  0x5d   : > { %4165 = vmatprep.subr.bf16.mxu0 %v4830_v9 }
  0x5e   : > { %4194 = vmatpush3.bf16.msra.mxu1 %v4590_v18 }
  0x5f   : > { %4195 = vmatprep.subr.bf16.mxu1 %v4830_v9 }
  0x60   : > { %4166 = vmatpush3.bf16.msra.mxu0 %v4596_v21  ;;  %v3846_v21 = vld [vmem:[%s6050_s21] ss:$0 sm:$0xff] }
  0x61   : > { %4167 = vmatprep.subr.bf16.mxu0 %v4830_v9 }
  0x62   : > { %4196 = vmatpush3.bf16.msra.mxu1 %v4592_v20 }
  0x63   : > { %4197 = vmatprep.subr.bf16.mxu1 %v4830_v9 }
  0x64   : > { %4168 = vmatpush3.bf16.msra.mxu0 %v4597_v25 }
  0x65   : > { %4169 = vmatprep.subr.bf16.mxu0 %v4830_v9 }
  0x66   : > { %4198 = vmatpush3.bf16.msra.mxu1 %v4594_v22 }
  0x67   : > { %4239 = vmatprep.subr.mxu1 %v4830_v9 }
  0x68   : > { %4170 = vmatpush3.bf16.msra.mxu0 %v4598_v26 }
  0x69   : > { %4200 = vmatmul.mubr.bf16.vlgmr.msra.gmra.mxu1 %v953_v27  ;;  %4211 = vmatprep.subr.bf16.mxu0 %v4830_v9 }
  0x6a   : > { %4203 = vmatprep.mubr.msk.bf16.mxu1 %vm4831_vm0, %v4830_v9 }
  0x6b   : > { %4172 = vmatmul.mubr.bf16.vlgmr.msra.gmra.mxu0 %v953_v27 }
  0x6c   : > { %4175 = vmatprep.mubr.msk.bf16.mxu0 %vm4831_vm0, %v4830_v9  ;;  %4212 = vmatpush3.bf16.msra.mxu0 %v4599_v30 }
  0x6d   : > { %4213 = vmatprep.subr.bf16.mxu0 %v4830_v9 }
  0x70   : > { %4214 = vmatpush3.bf16.msra.mxu0 %v4600_v31 }
  0x71   : > { %4204 = vmatmul.mubr.bf16.gmra.mxu1 %v954_v32  ;;  %4215 = vmatprep.subr.bf16.mxu0 %v4830_v9 }
  0x72   : > { %4207 = vmatprep.mubr.msk.bf16.mxu1 %vm4831_vm0, %v4830_v9 }
  0x73   : > { %4176 = vmatmul.mubr.bf16.gmra.mxu0 %v954_v32 }
  0x74   : > { %4179 = vmatprep.mubr.msk.bf16.mxu0 %vm4831_vm0, %v4830_v9  ;;  %4216 = vmatpush3.bf16.msra.mxu0 %v4601_v34 }
  0x75   : > { %4217 = vmatprep.subr.bf16.mxu0 %v4830_v9 }
  0x78   : > { %4218 = vmatpush3.bf16.msra.mxu0 %v4602_v35 }
  0x79   : > { %4208 = vmatmul.mubr.bf16.gmra.mxu1 %v955_v36  ;;  %4219 = vmatprep.subr.bf16.mxu0 %v4830_v9 }
  0x7a   : > { %4249 = vmatprep.mubr.msk.f32.mxu1 %vm4831_vm0, %v4830_v9 }
  0x7b   : > { %4180 = vmatmul.mubr.bf16.gmra.mxu0 %v955_v36 }
  0x7c   : > { %4220 = vmatpush3.bf16.msra.mxu0 %v4603_v37  ;;  %4227 = vmatprep.mubr.msk.bf16.mxu0 %vm4831_vm0, %v4830_v9 }
  0x7d   : > { %4221 = vmatprep.subr.bf16.mxu0 %v4830_v9 }
  0x80   : > { %4222 = vmatpush3.bf16.msra.mxu0 %v4604_v38 }
  0x81   : > { %4223 = vmatprep.subr.bf16.mxu0 %v4830_v9 }
  0x84   : > { %4224 = vmatpush3.bf16.msra.mxu0 %v4605_v39 }
  0x85   : > { %4225 = vmatprep.subr.bf16.mxu0 %v4830_v9 }
  0x88   : > { %4226 = vmatpush3.bf16.msra.mxu0 %v4606_v40 }
  0x89   : > { %4289 = vmatprep.subr.mxu0 %v4830_v9 }
  0x8b   : > { %4228 = vmatmul.mubr.bf16.vlgmr.msra.gmra.mxu0 %v953_v27 }
  0x8c   : > { %4231 = vmatprep.mubr.msk.bf16.mxu0 %vm4831_vm0, %v4830_v9 }
  0x93   : > { %4232 = vmatmul.mubr.bf16.gmra.mxu0 %v954_v32 }
  0x94   : > { %4235 = vmatprep.mubr.msk.bf16.mxu0 %vm4831_vm0, %v4830_v9 }
  0x9b   : > { %4236 = vmatmul.mubr.bf16.gmra.mxu0 %v955_v36 }
  0x9c   : > { %4299 = vmatprep.mubr.msk.f32.mxu0 %vm4831_vm0, %v4830_v9 }
 0x129   : > { %v1188_v41 = vpop.f32.mrf.mxu1 }
 0x12a   : > { %v1189_v10 = vadd.f32 %v3837_v47, %v1188_v41 }
 0x12b   : > { %v4201_v42 = vpop.f32.mrf.mxu1  ;;  %v1061_v44 = vpop.f32.mrf.mxu0 }
 0x12c   : > { %v5157_v59 = vadd.f32 %v3828_v56, %v1061_v44 }
 0x12d   : > { %v1191_v43 = vpop.f32.mrf.mxu1  ;;  %v4173_v46 = vpop.f32.mrf.mxu0 }
 0x12e   : > { %v5148_v55 = vadd.f32 %v3837_v47, %v1191_v43 }
 0x12f   : > { %v4202_v45 = vpop.f32.mrf.mxu1  ;;  %v1064_v49 = vpop.f32.mrf.mxu0 }
 0x130   : > { %v5163_v1 = vadd.f32 %v3828_v56, %v1064_v49 }
 0x131   : > { %v1196_v48 = vpop.f32.mrf.mxu1  ;;  %v4174_v52 = vpop.f32.mrf.mxu0 }
 0x132   : > { %v5144_v50 = vadd.f32 %v3837_v47, %v1196_v48 }
 0x133   : > { %v4205_v51 = vpop.f32.mrf.mxu1  ;;  %v1069_v54 = vpop.f32.mrf.mxu0 }
 0x134   : > { %1643 = vrot.lane.b32.xlu1 %v5144_v50, %s4832_s11  ;;  %v1070_v7 = vadd.f32 %v3828_v56, %v1069_v54 }
 0x135   : > { %v1199_v53 = vpop.f32.mrf.mxu1  ;;  %v4177_v58 = vpop.f32.mrf.mxu0 }
 0x136   : > { %v1200_v4 = vadd.f32 %v3837_v47, %v1199_v53 }
 0x137   : > { %v4206_v57 = vpop.f32.mrf.mxu1  ;;  %v1072_v61 = vpop.f32.mrf.mxu0 }
 0x138   : > { %1641 = vrot.lane.b32.xlu1 %v5148_v55, %s4832_s11  ;;  %v1073_v12 = vadd.f32 %v3828_v56, %v1072_v61 }
 0x139   : > { %v1204_v60 = vpop.f32.mrf.mxu1  ;;  %v4178_v0 = vpop.f32.mrf.mxu0 }
 0x13a   : > { %v1205_v62 = vadd.f32 %v3837_v47, %v1204_v60 }
 0x13b   : > { %v4209_v63 = vpop.f32.mrf.mxu1  ;;  %v1077_v3 = vpop.f32.mrf.mxu0 }
 0x13c   : > { %1647 = vrot.lane.b32.xlu0 %v1205_v62, %s4832_s11  ;;  %4240 = vmatpush3.xpose.msk.msra.mxu1 %vm1337_vm1, %v1205_v62  ;;  %v1078_v13 = vadd.f32 %v3828_v56, %v1077_v3  ;;  %v5347_v63 = vld [vmem:[%s4991_s20] sm:$0xff] }
 0x13d   : > { %1629 = vrot.lane.b32.xlu1 %v5157_v59, %s4832_s11  ;;  %v1207_v2 = vpop.f32.mrf.mxu1  ;;  %4241 = vmatprep.subr.mxu1 %v4830_v9  ;;  %v4181_v6 = vpop.f32.mrf.mxu0 }
 0x13f   : > { %v4210_v5 = vpop.f32.mrf.mxu1  ;;  %v1080_v8 = vpop.f32.mrf.mxu0 }
 0x140   : > { %1645 = vrot.lane.b32.xlu0 %v1200_v4, %s4832_s11  ;;  %4242 = vmatpush3.xpose.msk.msra.mxu1 %vm1337_vm1, %v1200_v4 }
 0x141   : > { %1631 = vrot.lane.b32.xlu1 %v5163_v1, %s4832_s11  ;;  %4243 = vmatprep.subr.mxu1 %v4830_v9  ;;  %v4182_v11 = vpop.f32.mrf.mxu0 }
 0x142   : > { %v5361_v11 = vld [vmem:[%s4991_s20 + $0x10] sm:$0xff] }
 0x144   : > { %1639 = vrot.lane.b32.xlu0 %v1189_v10, %s4832_s11  ;;  %4244 = vmatpush3.xpose.msk.msra.mxu1 %vm1337_vm1, %v5144_v50 }
 0x145   : > { %1633 = vrot.lane.b32.xlu1 %v1070_v7, %s4832_s11  ;;  %4245 = vmatprep.subr.mxu1 %v4830_v9 }
 0x148   : > { %1967 = vrot.lane.b32.xlu0 %v1205_v62, %s4833_s22  ;;  %4246 = vmatpush3.xpose.msk.msra.mxu1 %vm1337_vm1, %v5148_v55 }
 0x149   : > { %1635 = vrot.lane.b32.xlu1 %v1073_v12, %s4832_s11  ;;  %4247 = vmatprep.subr.mxu1 %v4830_v9 }
 0x14b   : > { %v1315_v14 = vpop.f32.mrf.mxu0 }
 0x14c   : > { %1965 = vrot.lane.b32.xlu0 %v1200_v4, %s4833_s22  ;;  %4248 = vmatpush3.xpose.msk.msra.mxu1 %vm1337_vm1, %v1189_v10  ;;  %v5244_v29 = vadd.f32 %v3846_v21, %v1315_v14 }
 0x14d   : > { %1637 = vrot.lane.b32.xlu1 %v1078_v13, %s4832_s11  ;;  %4264 = vmatprep.subr.mxu1 %v4830_v9  ;;  %v4229_v15 = vpop.f32.mrf.mxu0 }
 0x14f   : > { %4250 = vmatmul.mubr.msk.f32.vlgmr.msra.gmra.mxu1 %vm1337_vm1, %v5157_v59  ;;  %v1318_v16 = vpop.f32.mrf.mxu0 }
 0x150   : > { %1963 = vrot.lane.b32.xlu0 %v5144_v50, %s4833_s22  ;;  %4252 = vmatprep.mubr.msk.f32.mxu1 %vm4831_vm0, %v4830_v9  ;;  %v5247_v31 = vadd.f32 %v3846_v21, %v1318_v16 }
 0x151   : > { %1949 = vrot.lane.b32.xlu1 %v5157_v59, %s4833_s22  ;;  %v4230_v17 = vpop.f32.mrf.mxu0 }
 0x152   : > { %v5369_v17 = vld [vmem:[%s4991_s20 + $0x18] sm:$0xff] }
 0x153   : > { %4253 = vmatmul.mubr.msk.f32.gmra.mxu1 %vm1337_vm1, %v5163_v1  ;;  %v1323_v18 = vpop.f32.mrf.mxu0 }
 0x154   : > { %1961 = vrot.lane.b32.xlu0 %v5148_v55, %s4833_s22  ;;  %4255 = vmatprep.mubr.msk.f32.mxu1 %vm4831_vm0, %v4830_v9  ;;  %v5230_v23 = vadd.f32 %v3846_v21, %v1323_v18 }
 0x155   : > { %1951 = vrot.lane.b32.xlu1 %v5163_v1, %s4833_s22  ;;  %v4233_v19 = vpop.f32.mrf.mxu0 }
 0x157   : > { %4256 = vmatmul.mubr.msk.f32.gmra.mxu1 %vm1337_vm1, %v1070_v7  ;;  %v1326_v20 = vpop.f32.mrf.mxu0 }
 0x158   : > { %1959 = vrot.lane.b32.xlu0 %v1189_v10, %s4833_s22  ;;  %4258 = vmatprep.mubr.msk.f32.mxu1 %vm4831_vm0, %v4830_v9  ;;  %v5238_v27 = vadd.f32 %v3846_v21, %v1326_v20 }
 0x159   : > { %1953 = vrot.lane.b32.xlu1 %v1070_v7, %s4833_s22  ;;  %v4234_v22 = vpop.f32.mrf.mxu0 }
 0x15b   : > { %4259 = vmatmul.mubr.msk.f32.gmra.mxu1 %vm1337_vm1, %v1073_v12  ;;  %v1331_v24 = vpop.f32.mrf.mxu0 }
 0x15c   : > { %2282 = vrot.lane.b32.xlu0 %v1205_v62, %s4834_s27  ;;  %4261 = vmatprep.mubr.msk.f32.mxu1 %vm4831_vm0, %v4830_v9  ;;  %v5232_v25 = vadd.f32 %v3846_v21, %v1331_v24  ;;  %v5377_v24 = vld [vmem:[%s4991_s20 + $0x20] sm:$0xff] }
 0x15d   : > { %1955 = vrot.lane.b32.xlu1 %v1073_v12, %s4833_s22  ;;  %v4237_v26 = vpop.f32.mrf.mxu0 }
 0x15e   : > { %4265 = vmatpush3.msra.mxu1 %v5232_v25 }
 0x15f   : > { %4262 = vmatmul.mubr.msk.f32.gmra.mxu1 %vm1337_vm1, %v1078_v13  ;;  %4266 = vmatprep.subr.mxu1 %v4830_v9  ;;  %v1334_v28 = vpop.f32.mrf.mxu0 }
 0x160   : > { %2280 = vrot.lane.b32.xlu0 %v1200_v4, %s4834_s27  ;;  %4274 = vmatprep.mubr.msk.f32.mxu1 %vm4831_vm0, %v4830_v9  ;;  %v5353_v4 = vld [vmem:[%s4991_s20 + $0x8] sm:$0xff]  ;;  %s6051_s20 = sld [smem:[#allocation9_spill]] }
 0x161   : > { %1957 = vrot.lane.b32.xlu1 %v1078_v13, %s4833_s22  ;;  %4267 = vmatpush3.msra.mxu1 %v5238_v27  ;;  %v4238_v30 = vpop.f32.mrf.mxu0 }
 0x162   : > { %4268 = vmatprep.subr.mxu1 %v4830_v9 }
 0x163   : > { %4269 = vmatpush3.msra.mxu1 %v5230_v23 }
 0x164   : > { %2278 = vrot.lane.b32.xlu0 %v5144_v50, %s4834_s27  ;;  %4270 = vmatprep.subr.mxu1 %v4830_v9 }
 0x165   : > { %2264 = vrot.lane.b32.xlu1 %v5157_v59, %s4834_s27  ;;  %4271 = vmatpush3.msra.mxu1 %v5247_v31 }
 0x166   : > { %4272 = vmatprep.subr.mxu1 %v4830_v9 }
 0x167   : > { %4273 = vmatpush3.msra.mxu1 %v5244_v29 }
 0x168   : > { %2276 = vrot.lane.b32.xlu0 %v5148_v55, %s4834_s27  ;;  %4314 = vmatprep.subr.mxu1 %v4830_v9 }
 0x169   : > { %2268 = vrot.lane.b32.xlu1 %v1070_v7, %s4834_s27 }
 0x16c   : > { %2274 = vrot.lane.b32.xlu0 %v1189_v10, %s4834_s27 }
 0x16d   : > { %2272 = vrot.lane.b32.xlu1 %v1078_v13, %s4834_s27 }
 0x170   : > { %2266 = vrot.lane.b32.xlu0 %v5163_v1, %s4834_s27 }
 0x171   : > { %1833 = vrot.lane.b32.xlu1 %v5230_v23, %s4832_s11 }
 0x174   : > { %2270 = vrot.lane.b32.xlu0 %v1073_v12, %s4834_s27 }
 0x175   : > { %2148 = vrot.lane.b32.xlu1 %v5230_v23, %s4833_s22 }
 0x178   : > { %1829 = vrot.lane.b32.xlu0 %v5244_v29, %s4832_s11 }
 0x179   : > { %1837 = vrot.lane.b32.xlu1 %v5232_v25, %s4832_s11 }
 0x17c   : > { %1831 = vrot.lane.b32.xlu0 %v5247_v31, %s4832_s11 }
 0x17d   : > { %2152 = vrot.lane.b32.xlu1 %v5232_v25, %s4833_s22 }
 0x180   : > { %2146 = vrot.lane.b32.xlu0 %v5247_v31, %s4833_s22 }
 0x184   : > { %1835 = vrot.lane.b32.xlu0 %v5238_v27, %s4832_s11 }
 0x188   : > { %2150 = vrot.lane.b32.xlu0 %v5238_v27, %s4833_s22 }
 0x1a6   : > { %v1644_v32 = vpop.permute.xlu1 %1643 }
 0x1aa   : > { %v1642_v33 = vpop.permute.xlu1 %1641 }
 0x1ae   : > { %v1648_v34 = vpop.permute.xlu0 %1647 }
 0x1af   : > { %v1630_v35 = vpop.permute.xlu1 %1629  ;;  %4290 = vmatpush3.xpose.msk.msra.mxu0 %vm1337_vm1, %v1648_v34 }
 0x1b0   : > { %4291 = vmatprep.subr.mxu0 %v4830_v9 }
 0x1b2   : > { %v1646_v36 = vpop.permute.xlu0 %1645 }
 0x1b3   : > { %v1632_v37 = vpop.permute.xlu1 %1631  ;;  %4292 = vmatpush3.xpose.msk.msra.mxu0 %vm1337_vm1, %v1646_v36 }
 0x1b4   : > { %4293 = vmatprep.subr.mxu0 %v4830_v9 }
 0x1b6   : > { %v1640_v38 = vpop.permute.xlu0 %1639 }
 0x1b7   : > { %4294 = vmatpush3.xpose.msk.msra.mxu0 %vm1337_vm1, %v1644_v32  ;;  %v1634_v39 = vpop.permute.xlu1 %1633 }
 0x1b8   : > { %4295 = vmatprep.subr.mxu0 %v4830_v9 }
 0x1ba   : > { %v1968_v40 = vpop.permute.xlu0 %1967 }
 0x1bb   : > { %4296 = vmatpush3.xpose.msk.msra.mxu0 %vm1337_vm1, %v1642_v33  ;;  %v1636_v42 = vpop.permute.xlu1 %1635 }
 0x1bc   : > { %4297 = vmatprep.subr.mxu0 %v4830_v9 }
 0x1be   : > { %v1966_v41 = vpop.permute.xlu0 %1965 }
 0x1bf   : > { %4298 = vmatpush3.xpose.msk.msra.mxu0 %vm1337_vm1, %v1640_v38  ;;  %v1638_v44 = vpop.permute.xlu1 %1637 }
 0x1c0   : > { %4339 = vmatprep.subr.mxu0 %v4830_v9 }
 0x1c2   : > { %v1964_v43 = vpop.permute.xlu0 %1963  ;;  %4300 = vmatmul.mubr.msk.f32.vlgmr.msra.gmra.mxu0 %vm1337_vm1, %v1630_v35 }
 0x1c3   : > { %4340 = vmatpush3.xpose.msk.msra.mxu0 %vm1337_vm1, %v1968_v40  ;;  %4302 = vmatprep.mubr.msk.f32.mxu0 %vm4831_vm0, %v4830_v9  ;;  %v1950_v47 = vpop.permute.xlu1 %1949 }
 0x1c4   : > { %4341 = vmatprep.subr.mxu0 %v4830_v9 }
 0x1c6   : > { %v1962_v45 = vpop.permute.xlu0 %1961  ;;  %4303 = vmatmul.mubr.msk.f32.gmra.mxu0 %vm1337_vm1, %v1632_v37 }
 0x1c7   : > { %4342 = vmatpush3.xpose.msk.msra.mxu0 %vm1337_vm1, %v1966_v41  ;;  %4305 = vmatprep.mubr.msk.f32.mxu0 %vm4831_vm0, %v4830_v9  ;;  %v1952_v49 = vpop.permute.xlu1 %1951 }
 0x1c8   : > { %4343 = vmatprep.subr.mxu0 %v4830_v9 }
 0x1ca   : > { %v1960_v46 = vpop.permute.xlu0 %1959  ;;  %4306 = vmatmul.mubr.msk.f32.gmra.mxu0 %vm1337_vm1, %v1634_v39 }
 0x1cb   : > { %4344 = vmatpush3.xpose.msk.msra.mxu0 %vm1337_vm1, %v1964_v43  ;;  %4308 = vmatprep.mubr.msk.f32.mxu0 %vm4831_vm0, %v4830_v9  ;;  %v1954_v51 = vpop.permute.xlu1 %1953 }
 0x1cc   : > { %4345 = vmatprep.subr.mxu0 %v4830_v9 }
 0x1ce   : > { %v2283_v48 = vpop.permute.xlu0 %2282  ;;  %4309 = vmatmul.mubr.msk.f32.gmra.mxu0 %vm1337_vm1, %v1636_v42 }
 0x1cf   : > { %4346 = vmatpush3.xpose.msk.msra.mxu0 %vm1337_vm1, %v1962_v45  ;;  %4311 = vmatprep.mubr.msk.f32.mxu0 %vm4831_vm0, %v4830_v9  ;;  %v1956_v53 = vpop.permute.xlu1 %1955 }
 0x1d0   : > { %4347 = vmatprep.subr.mxu0 %v4830_v9 }
 0x1d2   : > { %4312 = vmatmul.mubr.msk.f32.gmra.mxu0 %vm1337_vm1, %v1638_v44  ;;  %v2281_v50 = vpop.permute.xlu0 %2280 }
 0x1d3   : > { %4348 = vmatpush3.xpose.msk.msra.mxu0 %vm1337_vm1, %v1960_v46  ;;  %4349 = vmatprep.mubr.msk.f32.mxu0 %vm4831_vm0, %v4830_v9  ;;  %v1958_v55 = vpop.permute.xlu1 %1957 }
 0x1d4   : > { %4389 = vmatprep.subr.mxu0 %v4830_v9 }
 0x1d6   : > { %4350 = vmatmul.mubr.msk.f32.vlgmr.msra.gmra.mxu0 %vm1337_vm1, %v1950_v47  ;;  %v2279_v52 = vpop.permute.xlu0 %2278 }
 0x1d7   : > { %4390 = vmatpush3.xpose.msk.msra.mxu0 %vm1337_vm1, %v2283_v48  ;;  %4352 = vmatprep.mubr.msk.f32.mxu0 %vm4831_vm0, %v4830_v9  ;;  %v2265_v57 = vpop.permute.xlu1 %2264 }
 0x1d8   : > { %4391 = vmatprep.subr.mxu0 %v4830_v9 }
 0x1da   : > { %4353 = vmatmul.mubr.msk.f32.gmra.mxu0 %vm1337_vm1, %v1952_v49  ;;  %v2277_v54 = vpop.permute.xlu0 %2276 }
 0x1db   : > { %4392 = vmatpush3.xpose.msk.msra.mxu0 %vm1337_vm1, %v2281_v50  ;;  %4355 = vmatprep.mubr.msk.f32.mxu0 %vm4831_vm0, %v4830_v9  ;;  %v2269_v59 = vpop.permute.xlu1 %2268 }
 0x1dc   : > { %4393 = vmatprep.subr.mxu0 %v4830_v9 }
 0x1de   : > { %4356 = vmatmul.mubr.msk.f32.gmra.mxu0 %vm1337_vm1, %v1954_v51  ;;  %v2275_v56 = vpop.permute.xlu0 %2274 }
 0x1df   : > { %4394 = vmatpush3.xpose.msk.msra.mxu0 %vm1337_vm1, %v2279_v52  ;;  %4358 = vmatprep.mubr.msk.f32.mxu0 %vm4831_vm0, %v4830_v9  ;;  %v2273_v61 = vpop.permute.xlu1 %2272 }
 0x1e0   : > { %4395 = vmatprep.subr.mxu0 %v4830_v9 }
 0x1e2   : > { %4359 = vmatmul.mubr.msk.f32.gmra.mxu0 %vm1337_vm1, %v1956_v53  ;;  %v2267_v58 = vpop.permute.xlu0 %2266 }
 0x1e3   : > { %4396 = vmatpush3.xpose.msk.msra.mxu0 %vm1337_vm1, %v2277_v54  ;;  %4361 = vmatprep.mubr.msk.f32.mxu0 %vm4831_vm0, %v4830_v9 }
 0x1e4   : > { %4397 = vmatprep.subr.mxu0 %v4830_v9 }
 0x1e6   : > { %4362 = vmatmul.mubr.msk.f32.gmra.mxu0 %vm1337_vm1, %v1958_v55  ;;  %v2271_v60 = vpop.permute.xlu0 %2270 }
 0x1e7   : > { %4398 = vmatpush3.xpose.msk.msra.mxu0 %vm1337_vm1, %v2275_v56  ;;  %4399 = vmatprep.mubr.msk.f32.mxu0 %vm4831_vm0, %v4830_v9 }
 0x1e8   : > { %4439 = vmatprep.subr.bf16.mxu0 %v4830_v9 }
 0x1ea   : > { %4400 = vmatmul.mubr.msk.f32.vlgmr.msra.gmra.mxu0 %vm1337_vm1, %v2265_v57  ;;  %v5386_v34 = vpop.permute.xlu0 %1829 }
 0x1eb   : > { %4402 = vmatprep.mubr.msk.f32.mxu0 %vm4831_vm0, %v4830_v9 }
 0x1ee   : > { %4403 = vmatmul.mubr.msk.f32.gmra.mxu0 %vm1337_vm1, %v2267_v58  ;;  %v5393_v42 = vpop.permute.xlu0 %1831 }
 0x1ef   : > { %4405 = vmatprep.mubr.msk.f32.mxu0 %vm4831_vm0, %v4830_v9 }
 0x1f2   : > { %4406 = vmatmul.mubr.msk.f32.gmra.mxu0 %vm1337_vm1, %v2269_v59  ;;  %v5403_v50 = vpop.permute.xlu0 %2146 }
 0x1f3   : > { %4408 = vmatprep.mubr.msk.f32.mxu0 %vm4831_vm0, %v4830_v9 }
 0x1f6   : > { %4409 = vmatmul.mubr.msk.f32.gmra.mxu0 %vm1337_vm1, %v2271_v60  ;;  %v5412_v58 = vpop.permute.xlu0 %1835 }
 0x1f7   : > { %4411 = vmatprep.mubr.msk.f32.mxu0 %vm4831_vm0, %v4830_v9 }
 0x1fa   : > { %4412 = vmatmul.mubr.msk.f32.gmra.mxu0 %vm1337_vm1, %v2273_v61 }
 0x1fb   : > { %4455 = vmatprep.mubr.msk.bf16.mxu0 %vm4831_vm0, %v4830_v9 }
 0x20f   : > { %v1434_v62 = vpop.f32.mrf.mxu1 }
 0x210   : > { %v1458_v0 = vmul.f32 0.17677669, %v1434_v62 }
 0x211   : > { %v4251_v1 = vpop.f32.mrf.mxu1 }
 0x212   : > { %v5350_v2 = vadd.f32 %v1458_v0, %v5347_v63  ;;  %v5417_v1 = vpop.permute.xlu0 %2150 }
 0x213   : > { %v1439_v3 = vpop.f32.mrf.mxu1 }
 0x214   : > { %v1459_v5 = vmul.f32 0.17677669, %v1439_v3  ;;  %v1469_v6 = vsel %vm1468_vm2, %v5350_v2, -inf }
 0x215   : > { %v4254_v7 = vpop.f32.mrf.mxu1  ;;  %1470 = vmax.xlane.f32.xlu0 %v1469_v6 }
 0x216   : > { %v5358_v8 = vadd.f32 %v1459_v5, %v5353_v4 }
 0x217   : > { %v1444_v10 = vpop.f32.mrf.mxu1 }
 0x218   : > { %v1460_v12 = vmul.f32 0.17677669, %v1444_v10  ;;  %v1472_v13 = vsel %vm1468_vm2, %v5358_v8, -inf }
 0x219   : > { %v4257_v14 = vpop.f32.mrf.mxu1  ;;  %1473 = vmax.xlane.f32.xlu1 %v1472_v13 }
 0x21a   : > { %v5366_v15 = vadd.f32 %v1460_v12, %v5361_v11 }
 0x21b   : > { %v1449_v16 = vpop.f32.mrf.mxu1 }
 0x21c   : > { %v1461_v18 = vmul.f32 0.17677669, %v1449_v16  ;;  %v1475_v19 = vsel %vm1468_vm2, %v5366_v15, -inf }
 0x21d   : > { %v4260_v20 = vpop.f32.mrf.mxu1  ;;  %1476 = vmax.xlane.f32.xlu0 %v1475_v19 }
 0x21e   : > { %v5374_v21 = vadd.f32 %v1461_v18, %v5369_v17  ;;  %v5425_v20 = vpop.permute.xlu1 %1833 }
 0x21f   : > { %v1454_v22 = vpop.f32.mrf.mxu1 }
 0x220   : > { %v1462_v26 = vmul.f32 0.17677669, %v1454_v22  ;;  %v1478_v28 = vsel %vm1468_vm2, %v5374_v21, -inf }
 0x221   : > { %1479 = vmax.xlane.f32.xlu0 %v1478_v28  ;;  %v4263_v30 = vpop.f32.mrf.mxu1 }
 0x222   : > { %v5382_v32 = vadd.f32 %v1462_v26, %v5377_v24 }
 0x224   : > { %v1481_v33 = vsel %vm1468_vm2, %v5382_v32, -inf }
 0x225   : > { %1482 = vmax.xlane.f32.xlu1 %v1481_v33 }
 0x282   : > { %v1735_v35 = vpop.f32.mrf.mxu0 }
 0x283   : > { %v1759_v36 = vmul.f32 0.17677669, %v1735_v35 }
 0x284   : > { %v4301_v37 = vpop.f32.mrf.mxu0 }
 0x285   : > { %v5389_v38 = vadd.f32 %v1759_v36, %v5347_v63  ;;  %v5432_v36 = vpop.permute.xlu1 %2148 }
 0x286   : > { %v1740_v39 = vpop.f32.mrf.mxu0 }
 0x287   : > { %v1760_v40 = vmul.f32 0.17677669, %v1740_v39  ;;  %v1769_v41 = vsel %vm1468_vm2, %v5389_v38, -inf }
 0x288   : > { %1770 = vmax.xlane.f32.xlu0 %v1769_v41  ;;  %v4304_v43 = vpop.f32.mrf.mxu0 }
 0x289   : > { %v5396_v44 = vadd.f32 %v1760_v40, %v5353_v4 }
 0x28a   : > { %v1745_v45 = vpop.f32.mrf.mxu0 }
 0x28b   : > { %v1761_v46 = vmul.f32 0.17677669, %v1745_v45  ;;  %v1772_v47 = vsel %vm1468_vm2, %v5396_v44, -inf  ;;  %v5439_v45 = vpop.permute.xlu1 %1837 }
 0x28c   : > { %1773 = vmax.xlane.f32.xlu1 %v1772_v47  ;;  %v4307_v48 = vpop.f32.mrf.mxu0 }
 0x28d   : > { %v5401_v49 = vadd.f32 %v1761_v46, %v5361_v11 }
 0x28e   : > { %v1750_v51 = vpop.f32.mrf.mxu0 }
 0x28f   : > { %v1762_v52 = vmul.f32 0.17677669, %v1750_v51  ;;  %v1775_v53 = vsel %vm1468_vm2, %v5401_v49, -inf }
 0x290   : > { %1776 = vmax.xlane.f32.xlu0 %v1775_v53  ;;  %v4310_v54 = vpop.f32.mrf.mxu0 }
 0x291   : > { %v5408_v55 = vadd.f32 %v1762_v52, %v5369_v17  ;;  %v5448_v54 = vpop.permute.xlu1 %2152 }
 0x292   : > { %v1755_v56 = vpop.f32.mrf.mxu0 }
 0x293   : > { %v1778_v57 = vsel %vm1468_vm2, %v5408_v55, -inf }
 0x294   : > { %1779 = vmax.xlane.f32.xlu1 %v1778_v57  ;;  %v4313_v59 = vpop.f32.mrf.mxu0 }
 0x296   : > { %v2055_v60 = vpop.f32.mrf.mxu0 }
 0x297   : > { %v2079_v61 = vmul.f32 0.17677669, %v2055_v60 }
 0x298   : > { %v4351_v62 = vpop.f32.mrf.mxu0 }
 0x299   : > { %v5415_v0 = vadd.f32 %v2079_v61, %v5347_v63 }
 0x29a   : > { %v2060_v3 = vpop.f32.mrf.mxu0 }
 0x29b   : > { %v2089_v5 = vsel %vm1468_vm2, %v5415_v0, -inf }
 0x29c   : > { %2090 = vmax.xlane.f32.xlu1 %v2089_v5  ;;  %v4354_v6 = vpop.f32.mrf.mxu0 }
 0x29e   : > { %v1471_v7 = vpop.xlane.xlu0 %1470  ;;  %v2065_v10 = vpop.f32.mrf.mxu0 }
 0x29f   : > { %v1484_v12 = vsub.f32 %v5350_v2, %v1471_v7  ;;  %v2081_v13 = vmul.f32 0.17677669, %v2065_v10 }
 0x2a0   : > { %v4357_v14 = vpop.f32.mrf.mxu0 }
 0x2a1   : > { %v1489_v16 = vmul.f32 1.442695, %v1484_v12  ;;  %v5423_v18 = vadd.f32 %v2081_v13, %v5361_v11  ;;  %v1763_v13 = vmul.f32 0.17677669, %v1755_v56 }
 0x2a2   : > { %v2070_v19 = vpop.f32.mrf.mxu0  ;;  %v1474_v6 = vpop.xlane.xlu1 %1473 }
 0x2a3   : > { %4655 = vpow2.f32 %v1489_v16  ;;  %v2095_v22 = vsel %vm1468_vm2, %v5423_v18, -inf  ;;  %v1485_v14 = vsub.f32 %v5358_v8, %v1474_v6 }
 0x2a4   : > { %2096 = vmax.xlane.f32.xlu1 %v2095_v22  ;;  %v4360_v26 = vpop.f32.mrf.mxu0 }
 0x2a5   : > { %v5463_v26 = vadd.f32 %v1763_v13, %v5377_v24 }
 0x2a6   : > { %v1477_v28 = vpop.xlane.xlu0 %1476  ;;  %2144 = vrot.lane.b32.xlu0 %v5244_v29, %s4833_s22  ;;  %v2075_v2 = vpop.f32.mrf.mxu0 }
 0x2a7   : > { %v1486_v30 = vsub.f32 %v5366_v15, %v1477_v28  ;;  %v2083_v33 = vmul.f32 0.17677669, %v2075_v2  ;;  %v2080_v28 = vmul.f32 0.17677669, %v2060_v3  ;;  %v1491_v2 = vmul.f32 1.442695, %v1485_v14 }
 0x2a8   : > { %v4363_v35 = vpop.f32.mrf.mxu0 }
 0x2a9   : > { %v1493_v37 = vmul.f32 1.442695, %v1486_v30  ;;  %v5435_v39 = vadd.f32 %v2083_v33, %v5377_v24  ;;  %v1781_v33 = vsel %vm1468_vm2, %v5463_v26, -inf  ;;  %v2082_v35 = vmul.f32 0.17677669, %v2070_v19 }
 0x2aa   : > { %v2370_v40 = vpop.f32.mrf.mxu0  ;;  %v1480_v30 = vpop.xlane.xlu0 %1479  ;;  %v5469_v8 = vadd.f32 %v2080_v28, %v5353_v4 }
 0x2ab   : > { %4657 = vpow2.f32 %v1493_v37  ;;  %v2101_v41 = vsel %vm1468_vm2, %v5435_v39, -inf  ;;  %v1487_v56 = vsub.f32 %v5374_v21, %v1480_v30  ;;  %v5474_v3 = vadd.f32 %v2082_v35, %v5369_v17 }
 0x2ac   : > { %2102 = vmax.xlane.f32.xlu1 %v2101_v41  ;;  %v4401_v43 = vpop.f32.mrf.mxu0  ;;  %4659 = vpow2.f32 %v1491_v2  ;;  %v2394_v41 = vmul.f32 0.17677669, %v2370_v40 }
 0x2ad   : > { %v1495_v37 = vmul.f32 1.442695, %v1487_v56  ;;  %v2092_v43 = vsel %vm1468_vm2, %v5469_v8, -inf }
 0x2ae   : > { %v2375_v46 = vpop.f32.mrf.mxu0  ;;  %v5479_v19 = vadd.f32 %v2394_v41, %v5347_v63  ;;  %v1483_v63 = vpop.xlane.xlu1 %1482 }
 0x2af   : > { %v2395_v47 = vmul.f32 0.17677669, %v2375_v46  ;;  %4661 = vpow2.f32 %v1495_v37  ;;  %v2098_v46 = vsel %vm1468_vm2, %v5474_v3, -inf }
 0x2b0   : > { %v5441_v15 = vpop.eup %4655  ;;  %v4404_v48 = vpop.f32.mrf.mxu0  ;;  %v2404_v21 = vsel %vm1468_vm2, %v5479_v19, -inf }
 0x2b1   : > { %v1499_v51 = vsel %vm1468_vm2, %v5441_v15, 0.0  ;;  %v5446_v52 = vadd.f32 %v2395_v47, %v5353_v4 }
 0x2b2   : > { %1500 = vadd.xlane.f32.xlu1 %v1499_v51  ;;  %v2380_v53 = vpop.f32.mrf.mxu0 }
 0x2b3   : > { %v2407_v59 = vsel %vm1468_vm2, %v5446_v52, -inf  ;;  %v2396_v4 = vmul.f32 0.17677669, %v2380_v53  ;;  %v1488_v53 = vsub.f32 %v5382_v32, %v1483_v63 }
 0x2b4   : > { %v4407_v57 = vpop.f32.mrf.mxu0 }
 0x2b5   : > { %v5490_v47 = vadd.f32 %v2396_v4, %v5361_v11  ;;  %v1497_v11 = vmul.f32 1.442695, %v1488_v53 }
 0x2b6   : > { %2408 = vmax.xlane.f32.xlu1 %v2407_v59  ;;  %v2385_v60 = vpop.f32.mrf.mxu0 }
 0x2b7   : > { %v2397_v61 = vmul.f32 0.17677669, %v2385_v60  ;;  %v2410_v51 = vsel %vm1468_vm2, %v5490_v47, -inf  ;;  %4663 = vpow2.f32 %v1497_v11 }
 0x2b8   : > { %v5452_v62 = vpop.eup %4657  ;;  %v4410_v5 = vpop.f32.mrf.mxu0 }
 0x2b9   : > { %v1505_v7 = vsel %vm1468_vm2, %v5452_v62, 0.0  ;;  %v5457_v10 = vadd.f32 %v2397_v61, %v5369_v17  ;;  %v5485_v40 = vpop.eup %4659 }
 0x2ba   : > { %1506 = vadd.xlane.f32.xlu1 %v1505_v7  ;;  %v2390_v12 = vpop.f32.mrf.mxu0  ;;  %v1502_v17 = vsel %vm1468_vm2, %v5485_v40, 0.0 }
 0x2bb   : > { %v2413_v22 = vsel %vm1468_vm2, %v5457_v10, -inf  ;;  %v2398_v48 = vmul.f32 0.17677669, %v2390_v12 }
 0x2bc   : > { %v4413_v16 = vpop.f32.mrf.mxu0 }
 0x2bd   : > { %v5500_v59 = vadd.f32 %v2398_v48, %v5377_v24 }
 0x2be   : > { %2414 = vmax.xlane.f32.xlu1 %v2413_v22 }
 0x2bf   : > { %v2416_v60 = vsel %vm1468_vm2, %v5500_v59, -inf }
 0x2c5   : > { %1782 = vmax.xlane.f32.xlu0 %v1781_v33 }
 0x2c9   : > { %2093 = vmax.xlane.f32.xlu0 %v2092_v43 }
 0x2cd   : > { %2099 = vmax.xlane.f32.xlu0 %v2098_v46 }
 0x2cf   : > { %2467 = vrot.lane.b32.xlu1 %v5232_v25, %s4834_s27  ;;  %v5494_v25 = vpop.eup %4661 }
 0x2d0   : > { %v1508_v57 = vsel %vm1468_vm2, %v5494_v25, 0.0  ;;  %v5504_v61 = vpop.eup %4663 }
 0x2d1   : > { %2405 = vmax.xlane.f32.xlu0 %v2404_v21  ;;  %v1511_v5 = vsel %vm1468_vm2, %v5504_v61, 0.0 }
 0x2d5   : > { %1503 = vadd.xlane.f32.xlu0 %v1502_v17 }
 0x2d9   : > { %2411 = vmax.xlane.f32.xlu0 %v2410_v51 }
 0x2dd   : > { %1509 = vadd.xlane.f32.xlu0 %v1508_v57 }
 0x2e1   : > { %2417 = vmax.xlane.f32.xlu0 %v2416_v60 }
 0x2f3   : > { %1512 = vadd.xlane.f32.xlu1 %v1511_v5 }
 0x311   : > { %v1771_v32 = vpop.xlane.xlu0 %1770 }
 0x312   : > { %v1784_v6 = vsub.f32 %v5389_v38, %v1771_v32 }
 0x314   : > { %v1789_v7 = vmul.f32 1.442695, %v1784_v6 }
 0x315   : > { %v1774_v12 = vpop.xlane.xlu1 %1773 }
 0x316   : > { %4665 = vpow2.f32 %v1789_v7  ;;  %v1785_v24 = vsub.f32 %v5396_v44, %v1774_v12 }
 0x318   : > { %v1791_v13 = vmul.f32 1.442695, %v1785_v24 }
 0x319   : > { %v1777_v14 = vpop.xlane.xlu0 %1776 }
 0x31a   : > { %4667 = vpow2.f32 %v1791_v13  ;;  %v1786_v16 = vsub.f32 %v5401_v49, %v1777_v14 }
 0x31c   : > { %v1793_v22 = vmul.f32 1.442695, %v1786_v16 }
 0x31d   : > { %v1780_v28 = vpop.xlane.xlu1 %1779  ;;  %v5530_v17 = vpop.permute.xlu0 %2144 }
 0x31e   : > { %4669 = vpow2.f32 %v1793_v22  ;;  %v1787_v2 = vsub.f32 %v5408_v55, %v1780_v28 }
 0x320   : > { %v1795_v30 = vmul.f32 1.442695, %v1787_v2 }
 0x322   : > { %4671 = vpow2.f32 %v1795_v30 }
 0x323   : > { %v5512_v33 = vpop.eup %4665 }
 0x324   : > { %v1799_v38 = vsel %vm1468_vm2, %v5512_v33, 0.0 }
 0x325   : > { %1800 = vadd.xlane.f32.xlu0 %v1799_v38  ;;  %v2091_v37 = vpop.xlane.xlu1 %2090 }
 0x326   : > { %v2104_v48 = vsub.f32 %v5415_v0, %v2091_v37 }
 0x327   : > { %v5516_v35 = vpop.eup %4667 }
 0x328   : > { %v1802_v44 = vsel %vm1468_vm2, %v5516_v35, 0.0 }
 0x329   : > { %1803 = vadd.xlane.f32.xlu1 %v1802_v44 }
 0x32b   : > { %v5520_v49 = vpop.eup %4669 }
 0x32c   : > { %v1805_v56 = vsel %vm1468_vm2, %v5520_v49, 0.0 }
 0x32d   : > { %1806 = vadd.xlane.f32.xlu0 %v1805_v56  ;;  %v2097_v43 = vpop.xlane.xlu1 %2096 }
 0x32e   : > { %v2106_v57 = vsub.f32 %v5423_v18, %v2097_v43 }
 0x32f   : > { %v5524_v55 = vpop.eup %4671 }
 0x330   : > { %v1808_v41 = vsel %vm1468_vm2, %v5524_v55, 0.0 }
 0x331   : > { %1809 = vadd.xlane.f32.xlu1 %v1808_v41 }
 0x335   : > { %v2103_v46 = vpop.xlane.xlu1 %2102 }
 0x33b   : > { %v1501_v4 = vpop.xlane.xlu1 %1500 }
 0x33c   : > { %4673 = vrcp.f32 %v1501_v4 }
 0x33f   : > { %v2409_v51 = vpop.xlane.xlu1 %2408 }
 0x343   : > { %2465 = vrot.lane.b32.xlu0 %v5238_v27, %s4834_s27  ;;  %v1507_v60 = vpop.xlane.xlu1 %1506 }
 0x347   : > { %v2415_v6 = vpop.xlane.xlu1 %2414 }
 0x349   : > { %v4674_v21 = vpop.eup %4673 }
 0x34a   : > { %v1519_v63 = vmul.f32 %v4674_v21, %v5441_v15  ;;  %v2109_v15 = vmul.f32 1.442695, %v2104_v48 }
 0x34c   : > { %4275 = vmatmul.mubr.msk.f32.vlgmr.msra.gmra.mxu1 %vm1468_vm2, %v1519_v63 }
 0x34d   : > { %4315 = vmatpush3.msra.mxu1 %v5439_v45  ;;  %4277 = vmatprep.mubr.msk.f32.mxu1 %vm4831_vm0, %v4830_v9 }
 0x34e   : > { %4316 = vmatprep.subr.mxu1 %v4830_v9  ;;  %v1783_v53 = vpop.xlane.xlu0 %1782 }
 0x34f   : > { %v1788_v27 = vsub.f32 %v5463_v26, %v1783_v53  ;;  %4317 = vmatpush3.msra.mxu1 %v5412_v58  ;;  %v2113_v58 = vmul.f32 1.442695, %v2106_v57  ;;  %v2108_v26 = vsub.f32 %v5435_v39, %v2103_v46 }
 0x350   : > { %4318 = vmatprep.subr.mxu1 %v4830_v9 }
 0x351   : > { %v1797_v11 = vmul.f32 1.442695, %v1788_v27  ;;  %4319 = vmatpush3.msra.mxu1 %v5425_v20 }
 0x352   : > { %4320 = vmatprep.subr.mxu1 %v4830_v9  ;;  %v2094_v0 = vpop.xlane.xlu0 %2093 }
 0x353   : > { %4675 = vpow2.f32 %v1797_v11  ;;  %v2105_v45 = vsub.f32 %v5469_v8, %v2094_v0  ;;  %4321 = vmatpush3.msra.mxu1 %v5393_v42  ;;  %v2117_v8 = vmul.f32 1.442695, %v2108_v26  ;;  %v2420_v42 = vsub.f32 %v5446_v52, %v2409_v51 }
 0x354   : > { %4322 = vmatprep.subr.mxu1 %v4830_v9  ;;  %4677 = vpow2.f32 %v2109_v15 }
 0x355   : > { %v2111_v5 = vmul.f32 1.442695, %v2105_v45  ;;  %4323 = vmatpush3.msra.mxu1 %v5386_v34  ;;  %v2426_v39 = vmul.f32 1.442695, %v2420_v42  ;;  %v2422_v34 = vsub.f32 %v5457_v10, %v2415_v6 }
 0x356   : > { %v2100_v18 = vpop.xlane.xlu0 %2099  ;;  %4364 = vmatprep.subr.mxu1 %v4830_v9 }
 0x357   : > { %4679 = vpow2.f32 %v2111_v5  ;;  %v2107_v20 = vsub.f32 %v5474_v3, %v2100_v18  ;;  %v2430_v3 = vmul.f32 1.442695, %v2422_v34 }
 0x358   : > { %4681 = vpow2.f32 %v2113_v58 }
 0x359   : > { %v2115_v32 = vmul.f32 1.442695, %v2107_v20 }
 0x35a   : > { %v2406_v7 = vpop.xlane.xlu0 %2405 }
 0x35b   : > { %4683 = vpow2.f32 %v2115_v32  ;;  %v2419_v12 = vsub.f32 %v5479_v19, %v2406_v7 }
 0x35c   : > { %4685 = vpow2.f32 %v2117_v8 }
 0x35d   : > { %v2424_v24 = vmul.f32 1.442695, %v2419_v12 }
 0x35e   : > { %v1504_v13 = vpop.xlane.xlu0 %1503 }
 0x35f   : > { %4687 = vpow2.f32 %v2424_v24 }
 0x360   : > { %v5555_v14 = vpop.eup %4675  ;;  %4689 = vrcp.f32 %v1504_v13 }
 0x361   : > { %4691 = vpow2.f32 %v2426_v39  ;;  %v1811_v52 = vsel %vm1468_vm2, %v5555_v14, 0.0  ;;  %v5559_v16 = vpop.eup %4677 }
 0x362   : > { %4693 = vrcp.f32 %v1507_v60  ;;  %v2412_v22 = vpop.xlane.xlu0 %2411  ;;  %1812 = vadd.xlane.f32.xlu0 %v1811_v52  ;;  %v2119_v30 = vsel %vm1468_vm2, %v5559_v16, 0.0  ;;  %v5605_v60 = vpop.permute.xlu1 %2467 }
 0x363   : > { %v2421_v19 = vsub.f32 %v5490_v47, %v2412_v22  ;;  %4695 = vpow2.f32 %v2430_v3 }
 0x364   : > { %v5562_v28 = vpop.eup %4679 }
 0x365   : > { %v2428_v10 = vmul.f32 1.442695, %v2421_v19  ;;  %v2122_v2 = vsel %vm1468_vm2, %v5562_v28, 0.0  ;;  %v5568_v38 = vpop.eup %4681 }
 0x366   : > { %v1510_v44 = vpop.xlane.xlu0 %1509  ;;  %2123 = vadd.xlane.f32.xlu1 %v2122_v2  ;;  %2120 = vadd.xlane.f32.xlu0 %v2119_v30  ;;  %v2125_v37 = vsel %vm1468_vm2, %v5568_v38, 0.0 }
 0x367   : > { %4697 = vpow2.f32 %v2428_v10 }
 0x368   : > { %v5570_v56 = vpop.eup %4683  ;;  %4699 = vrcp.f32 %v1510_v44 }
 0x369   : > { %v2128_v47 = vsel %vm1468_vm2, %v5570_v56, 0.0  ;;  %v5576_v41 = vpop.eup %4685 }
 0x36a   : > { %2129 = vadd.xlane.f32.xlu1 %v2128_v47  ;;  %2126 = vadd.xlane.f32.xlu0 %v2125_v37  ;;  %v2131_v4 = vsel %vm1468_vm2, %v5576_v41, 0.0 }
 0x36c   : > { %v5578_v43 = vpop.eup %4687 }
 0x36d   : > { %v4690_v46 = vpop.eup %4689  ;;  %v2434_v21 = vsel %vm1468_vm2, %v5578_v43, 0.0 }
 0x36e   : > { %v5584_v63 = vpop.eup %4691  ;;  %2132 = vadd.xlane.f32.xlu1 %v2131_v4  ;;  %2435 = vadd.xlane.f32.xlu0 %v2434_v21  ;;  %v1520_v48 = vmul.f32 %v4690_v46, %v5485_v40 }
 0x36f   : > { %v4694_v51 = vpop.eup %4693  ;;  %v2437_v53 = vsel %vm1468_vm2, %v5584_v63, 0.0 }
 0x370   : > { %4278 = vmatmul.mubr.msk.f32.gmra.mxu1 %vm1468_vm2, %v1520_v48  ;;  %v5592_v27 = vpop.eup %4695  ;;  %v1521_v15 = vmul.f32 %v4694_v51, %v5452_v62 }
 0x371   : > { %4280 = vmatprep.mubr.msk.f32.mxu1 %vm4831_vm0, %v4830_v9  ;;  %v2443_v40 = vsel %vm1468_vm2, %v5592_v27, 0.0 }
 0x372   : > { %2438 = vadd.xlane.f32.xlu1 %v2437_v53 }
 0x374   : > { %v5595_v57 = vpop.eup %4697  ;;  %4281 = vmatmul.mubr.msk.f32.gmra.mxu1 %vm1468_vm2, %v1521_v15 }
 0x375   : > { %v4700_v11 = vpop.eup %4699  ;;  %4283 = vmatprep.mubr.msk.f32.mxu1 %vm4831_vm0, %v4830_v9  ;;  %v2440_v0 = vsel %vm1468_vm2, %v5595_v57, 0.0 }
 0x376   : > { %2444 = vadd.xlane.f32.xlu1 %v2443_v40  ;;  %2441 = vadd.xlane.f32.xlu0 %v2440_v0  ;;  %v1522_v45 = vmul.f32 %v4700_v11, %v5494_v25  ;;  %v2418_v25 = vpop.xlane.xlu0 %2417 }
 0x377   : > { %v2423_v5 = vsub.f32 %v5500_v59, %v2418_v25 }
 0x378   : > { %4284 = vmatmul.mubr.msk.f32.gmra.mxu1 %vm1468_vm2, %v1522_v45 }
 0x379   : > { %4286 = vmatprep.mubr.msk.f32.mxu1 %vm4831_vm0, %v4830_v9  ;;  %v2432_v18 = vmul.f32 1.442695, %v2423_v5 }
 0x37c   : > { %v1513_v62 = vpop.xlane.xlu1 %1512 }
 0x37d   : > { %4701 = vrcp.f32 %v1513_v62 }
 0x37e   : > { %4703 = vpow2.f32 %v2432_v18 }
 0x387   : > { %2463 = vrot.lane.b32.xlu1 %v5230_v23, %s4834_s27 }
 0x38a   : > { %v4702_v58 = vpop.eup %4701 }
 0x38b   : > { %v1523_v26 = vmul.f32 %v4702_v58, %v5504_v61  ;;  %v5621_v23 = vpop.eup %4703 }
 0x38c   : > { %2461 = vrot.lane.b32.xlu0 %v5247_v31, %s4834_s27  ;;  %v2446_v61 = vsel %vm1468_vm2, %v5621_v23, 0.0 }
 0x38d   : > { %4287 = vmatmul.mubr.msk.f32.gmra.mxu1 %vm1468_vm2, %v1523_v26 }
 0x38e   : > { %4324 = vmatprep.mubr.msk.f32.mxu1 %vm4831_vm0, %v4830_v9 }
 0x390   : > { %2459 = vrot.lane.b32.xlu0 %v5244_v29, %s4834_s27 }
 0x3ab   : > { %2447 = vadd.xlane.f32.xlu1 %v2446_v61 }
 0x3ae   : > { %v1801_v31 = vpop.xlane.xlu0 %1800 }
 0x3af   : > { %4705 = vrcp.f32 %v1801_v31 }
 0x3b2   : > { %v1804_v20 = vpop.xlane.xlu1 %1803 }
 0x3b3   : > { %4707 = vrcp.f32 %v1804_v20 }
 0x3b6   : > { %v1807_v8 = vpop.xlane.xlu0 %1806 }
 0x3b7   : > { %4709 = vrcp.f32 %v1807_v8 }
 0x3ba   : > { %v1810_v42 = vpop.xlane.xlu1 %1809 }
 0x3bb   : > { %4711 = vrcp.f32 %v1810_v42 }
 0x3bc   : > { %v4706_v32 = vpop.eup %4705 }
 0x3bd   : > { %v1819_v29 = vmul.f32 %v4706_v32, %v5512_v33 }
 0x3bf   : > { %4325 = vmatmul.mubr.msk.f32.vlgmr.msra.gmra.mxu1 %vm1468_vm2, %v1819_v29 }
 0x3c0   : > { %v4708_v59 = vpop.eup %4707  ;;  %4365 = vmatpush3.msra.mxu1 %v5448_v54  ;;  %4327 = vmatprep.mubr.msk.f32.mxu1 %vm4831_vm0, %v4830_v9 }
 0x3c1   : > { %4366 = vmatprep.subr.mxu1 %v4830_v9  ;;  %v1820_v6 = vmul.f32 %v4708_v59, %v5516_v35  ;;  %v4607_v59 = vld [vmem:[%s6051_s20 + $0x38] sm:$0xff]  }
 0x3c2   : > { %4367 = vmatpush3.msra.mxu1 %v5417_v1  ;;  %4440 = vmatpush3.bf16.msra.mxu0 %v4607_v59 }
 0x3c3   : > { %4368 = vmatprep.subr.mxu1 %v4830_v9  ;;  %4328 = vmatmul.mubr.msk.f32.gmra.mxu1 %vm1468_vm2, %v1820_v6  ;;  %v4608_v6 = vld [vmem:[%s6051_s20 + $0x30] sm:$0xff]  }
 0x3c4   : > { %v4710_v7 = vpop.eup %4709  ;;  %4369 = vmatpush3.msra.mxu1 %v5432_v36  ;;  %4330 = vmatprep.mubr.msk.f32.mxu1 %vm4831_vm0, %v4830_v9 }
 0x3c5   : > { %4370 = vmatprep.subr.mxu1 %v4830_v9  ;;  %v1821_v54 = vmul.f32 %v4710_v7, %v5520_v49  ;;  %4441 = vmatprep.subr.bf16.mxu0 %v4830_v9 }
 0x3c6   : > { %4371 = vmatpush3.msra.mxu1 %v5403_v50  ;;  %v2466_v50 = vpop.permute.xlu0 %2465  ;;  %4442 = vmatpush3.bf16.msra.mxu0 %v4608_v6 }
 0x3c7   : > { %4372 = vmatprep.subr.mxu1 %v4830_v9  ;;  %4331 = vmatmul.mubr.msk.f32.gmra.mxu1 %vm1468_vm2, %v1821_v54  ;;  %v4609_v54 = vld [vmem:[%s6051_s20 + $0x28] sm:$0xff]  }
 0x3c8   : > { %v4712_v1 = vpop.eup %4711  ;;  %4373 = vmatpush3.msra.mxu1 %v5530_v17  ;;  %4333 = vmatprep.mubr.msk.f32.mxu1 %vm4831_vm0, %v4830_v9 }
 0x3c9   : > { %v1822_v36 = vmul.f32 %v4712_v1, %v5524_v55  ;;  %4414 = vmatprep.subr.mxu1 %v4830_v9  ;;  %4443 = vmatprep.subr.bf16.mxu0 %v4830_v9 }
 0x3ca   : > { %4444 = vmatpush3.bf16.msra.mxu0 %v4609_v54 }
 0x3cb   : > { %4334 = vmatmul.mubr.msk.f32.gmra.mxu1 %vm1468_vm2, %v1822_v36  ;;  %v4610_v36 = vld [vmem:[%s6051_s20 + $0x20] sm:$0xff]   ;;  %4445 = vmatprep.subr.bf16.mxu0 %v4830_v9 }
 0x3cc   : > { %4336 = vmatprep.mubr.msk.f32.mxu1 %vm4831_vm0, %v4830_v9 }
 0x3ce   : > { %4446 = vmatpush3.bf16.msra.mxu0 %v4610_v36 }
 0x3cf   : > { %4447 = vmatprep.subr.bf16.mxu0 %v4830_v9 }
 0x3eb   : > { %v1813_v33 = vpop.xlane.xlu0 %1812 }
 0x3ec   : > { %4713 = vrcp.f32 %v1813_v33  ;;  %v4611_v33 = vld [vmem:[%s6051_s20 + $0x18] sm:$0xff]  }
 0x3ed   : > { %4448 = vmatpush3.bf16.msra.mxu0 %v4611_v33 }
 0x3ee   : > { %4449 = vmatprep.subr.bf16.mxu0 %v4830_v9 }
 0x3ef   : > { %v2124_v35 = vpop.xlane.xlu1 %2123  ;;  %v2121_v49 = vpop.xlane.xlu0 %2120 }
 0x3f0   : > { %4715 = vrcp.f32 %v2121_v49 }
 0x3f1   : > { %4717 = vrcp.f32 %v2124_v35 }
 0x3f3   : > { %v2130_v17 = vpop.xlane.xlu1 %2129  ;;  %v2127_v12 = vpop.xlane.xlu0 %2126 }
 0x3f4   : > { %4719 = vrcp.f32 %v2127_v12  ;;  %v4612_v12 = vld [vmem:[%s6051_s20 + $0x10] sm:$0xff]  }
 0x3f5   : > { %4721 = vrcp.f32 %v2130_v17  ;;  %4450 = vmatpush3.bf16.msra.mxu0 %v4612_v12  ;;  %v3915_v12 = vld [vmem:[%s6053_s4] ss:$0 sm:$0xff] }
 0x3f6   : > { %4451 = vmatprep.subr.bf16.mxu0 %v4830_v9 }
 0x3f7   : > { %v2133_v39 = vpop.xlane.xlu1 %2132  ;;  %v2436_v24 = vpop.xlane.xlu0 %2435 }
 0x3f8   : > { %4723 = vrcp.f32 %v2133_v39 }
 0x3f9   : > { %v4714_v34 = vpop.eup %4713  ;;  %4725 = vrcp.f32 %v2436_v24 }
 0x3fa   : > { %v1823_v55 = vmul.f32 %v4714_v34, %v5555_v14 }
 0x3fb   : > { %v2439_v13 = vpop.xlane.xlu1 %2438 }
 0x3fc   : > { %4337 = vmatmul.mubr.msk.f32.gmra.mxu1 %vm1468_vm2, %v1823_v55  ;;  %4727 = vrcp.f32 %v2439_v13  ;;  %v4613_v55 = vld [vmem:[%s6051_s20 + $0x8] sm:$0xff]  }
 0x3fd   : > { %4374 = vmatprep.mubr.msk.f32.mxu1 %vm4831_vm0, %v4830_v9  ;;  %v4716_v3 = vpop.eup %4715  ;;  %4452 = vmatpush3.bf16.msra.mxu0 %v4613_v55  ;;  %v4775_v55 = vld [vmem:[#allocation2 + $0x8] sm:$0xff] }
 0x3fe   : > { %v2139_v52 = vmul.f32 %v4716_v3, %v5559_v16  ;;  %v4718_v10 = vpop.eup %4717  ;;  %4453 = vmatprep.subr.bf16.mxu0 %v4830_v9 }
 0x3ff   : > { %v2445_v22 = vpop.xlane.xlu1 %2444  ;;  %v2442_v19 = vpop.xlane.xlu0 %2441  ;;  %v2140_v30 = vmul.f32 %v4718_v10, %v5562_v28 }
 0x400   : > { %4375 = vmatmul.mubr.msk.f32.vlgmr.msra.gmra.mxu1 %vm1468_vm2, %v2139_v52  ;;  %4729 = vrcp.f32 %v2442_v19  ;;  %v4614_v52 = vld [vmem:[%s6051_s20] sm:$0xff]  }
 0x401   : > { %4415 = vmatpush3.msra.mxu1 %v5605_v60  ;;  %4377 = vmatprep.mubr.msk.f32.mxu1 %vm4831_vm0, %v4830_v9  ;;  %v4720_v44 = vpop.eup %4719  ;;  %4731 = vrcp.f32 %v2445_v22 }
 0x402   : > { %4416 = vmatprep.subr.mxu1 %v4830_v9  ;;  %v2141_v47 = vmul.f32 %v4720_v44, %v5568_v38  ;;  %v4722_v37 = vpop.eup %4721  ;;  %4454 = vmatpush3.bf16.msra.mxu0 %v4614_v52  ;;  %v4776_v52 = vld [vmem:[#allocation2] sm:$0xff] }
 0x403   : > { %v2464_v14 = vpop.permute.xlu1 %2463  ;;  %v2462_v2 = vpop.permute.xlu0 %2461  ;;  %4417 = vmatpush3.msra.mxu1 %v2466_v50  ;;  %v2142_v28 = vmul.f32 %v4722_v37, %v5570_v56 }
 0x404   : > { %4418 = vmatprep.subr.mxu1 %v4830_v9  ;;  %4378 = vmatmul.mubr.msk.f32.gmra.mxu1 %vm1468_vm2, %v2140_v30 }
 0x405   : > { %4419 = vmatpush3.msra.mxu1 %v2464_v14  ;;  %4380 = vmatprep.mubr.msk.f32.mxu1 %vm4831_vm0, %v4830_v9  ;;  %v4724_v46 = vpop.eup %4723 }
 0x406   : > { %4420 = vmatprep.subr.mxu1 %v4830_v9  ;;  %v2143_v38 = vmul.f32 %v4724_v46, %v5576_v41  ;;  %v4726_v48 = vpop.eup %4725 }
 0x407   : > { %v2460_v16 = vpop.permute.xlu0 %2459  ;;  %4421 = vmatpush3.msra.mxu1 %v2462_v2  ;;  %v2454_v56 = vmul.f32 %v4726_v48, %v5578_v43 }
 0x408   : > { %4422 = vmatprep.subr.mxu1 %v4830_v9  ;;  %4381 = vmatmul.mubr.msk.f32.gmra.mxu1 %vm1468_vm2, %v2141_v47 }
 0x409   : > { %4423 = vmatpush3.msra.mxu1 %v2460_v16  ;;  %4383 = vmatprep.mubr.msk.f32.mxu1 %vm4831_vm0, %v4830_v9  ;;  %v4728_v51 = vpop.eup %4727 }
 0x40a   : > { %v2455_v53 = vmul.f32 %v4728_v51, %v5584_v63 }
 0x40c   : > { %v5673_v4 = vpop.f32.mrf.mxu1  ;;  %4384 = vmatmul.mubr.msk.f32.gmra.mxu1 %vm1468_vm2, %v2142_v28 }
 0x40d   : > { %4386 = vmatprep.mubr.msk.f32.mxu1 %vm4831_vm0, %v4830_v9  ;;  %v4730_v15 = vpop.eup %4729 }
 0x40e   : > { %v4276_v21 = vpop.f32.mrf.mxu1  ;;  %v2456_v41 = vmul.f32 %v4730_v15, %v5595_v57  ;;  %v4732_v11 = vpop.eup %4731 }
 0x40f   : > { %v2457_v43 = vmul.f32 %v4732_v11, %v5592_v27 }
 0x410   : > { %4387 = vmatmul.mubr.msk.f32.gmra.mxu1 %vm1468_vm2, %v2143_v38 }
 0x411   : > { %4424 = vmatprep.mubr.msk.f32.mxu1 %vm4831_vm0, %v4830_v9 }
 0x414   : > { %4425 = vmatmul.mubr.msk.f32.vlgmr.msra.gmra.mxu1 %vm1468_vm2, %v2454_v56 }
 0x415   : > { %4427 = vmatprep.mubr.msk.f32.mxu1 %vm4831_vm0, %v4830_v9 }
 0x418   : > { %4428 = vmatmul.mubr.msk.f32.gmra.mxu1 %vm1468_vm2, %v2455_v53 }
 0x419   : > { %4430 = vmatprep.mubr.msk.f32.mxu1 %vm4831_vm0, %v4830_v9 }
 0x41c   : > { %4431 = vmatmul.mubr.msk.f32.gmra.mxu1 %vm1468_vm2, %v2456_v41 }
 0x41d   : > { %4433 = vmatprep.mubr.msk.f32.mxu1 %vm4831_vm0, %v4830_v9 }
 0x420   : > { %4434 = vmatmul.mubr.msk.f32.gmra.mxu1 %vm1468_vm2, %v2457_v43 }
 0x421   : > { %4436 = vmatprep.mubr.msk.f32.mxu1 %vm4831_vm0, %v4830_v9 }
 0x430   : > { %v5698_v63 = vpop.f32.mrf.mxu1 }
 0x432   : > { %v4279_v40 = vpop.f32.mrf.mxu1 }
 0x434   : > { %v5700_v0 = vpop.f32.mrf.mxu1  ;;  %v2448_v45 = vpop.xlane.xlu1 %2447 }
 0x435   : > { %4733 = vrcp.f32 %v2448_v45 }
 0x436   : > { %v4282_v57 = vpop.f32.mrf.mxu1 }
 0x438   : > { %v5702_v60 = vpop.f32.mrf.mxu1 }
 0x43a   : > { %v4285_v62 = vpop.f32.mrf.mxu1 }
 0x442   : > { %v4734_v58 = vpop.eup %4733 }
 0x443   : > { %v2458_v26 = vmul.f32 %v4734_v58, %v5621_v23 }
 0x445   : > { %4437 = vmatmul.mubr.msk.f32.gmra.mxu1 %vm1468_vm2, %v2458_v26 }
 0x44d   : > { %v5706_v27 = vpop.f32.mrf.mxu1 }
 0x44f   : > { %v4288_v25 = vpop.f32.mrf.mxu1 }
 0x47f   : > { %v1925_v5 = vpop.f32.mrf.mxu1 }
 0x481   : > { %v4326_v18 = vpop.f32.mrf.mxu1 }
 0x483   : > { %v1930_v61 = vpop.f32.mrf.mxu1 }
 0x484   : > { %v4553_v31 = vpack.i.bf16 %v1930_v61, %v1925_v5 }
 0x485   : > { %v4329_v20 = vpop.f32.mrf.mxu1 }
 0x486   : > { %4554 = vrot.lane.b32.xlu0 %v4553_v31, %s4834_s27 }
 0x487   : > { %v1935_v8 = vpop.f32.mrf.mxu1 }
 0x489   : > { %v4332_v42 = vpop.f32.mrf.mxu1 }
 0x48b   : > { %v1940_v32 = vpop.f32.mrf.mxu1 }
 0x48c   : > { %v4558_v23 = vpack.i.bf16 %v1940_v32, %v1935_v8 }
 0x48d   : > { %v4335_v29 = vpop.f32.mrf.mxu1 }
 0x48e   : > { %4559 = vrot.lane.b32.xlu0 %v4558_v23, %s4834_s27 }
 0x4bc   : > { %v1945_v7 = vpop.f32.mrf.mxu1 }
 0x4bd   : > { %2592 = vrot.lane.b32.xlu1 %v1945_v7, %s4834_s27 }
 0x4be   : > { %v4338_v1 = vpop.f32.mrf.mxu1 }
 0x4c0   : > { %v2240_v50 = vpop.f32.mrf.mxu1 }
 0x4c2   : > { %v4376_v35 = vpop.f32.mrf.mxu1 }
 0x4c4   : > { %v2245_v49 = vpop.f32.mrf.mxu1 }
 0x4c5   : > { %v4563_v17 = vpack.i.bf16 %v2245_v49, %v2240_v50 }
 0x4c6   : > { %v4379_v39 = vpop.f32.mrf.mxu1 }
 0x4c7   : > { %4564 = vrot.lane.b32.xlu0 %v4563_v17, %s4833_s22 }
 0x4c8   : > { %v2250_v34 = vpop.f32.mrf.mxu1 }
 0x4ca   : > { %v4382_v24 = vpop.f32.mrf.mxu1 }
 0x4cc   : > { %v2255_v13 = vpop.f32.mrf.mxu1 }
 0x4cd   : > { %v4573_v47 = vpack.i.bf16 %v2255_v13, %v2250_v34 }
 0x4ce   : > { %v4385_v3 = vpop.f32.mrf.mxu1 }
 0x4d0   : > { %v2260_v22 = vpop.f32.mrf.mxu1 }
 0x4d2   : > { %v4388_v19 = vpop.f32.mrf.mxu1 }
 0x4d4   : > { %v2555_v10 = vpop.f32.mrf.mxu1 }
 0x4d6   : > { %v4426_v14 = vpop.f32.mrf.mxu1 }
 0x4d8   : > { %v2560_v2 = vpop.f32.mrf.mxu1 }
 0x4d9   : > { %v4568_v30 = vpack.i.bf16 %v2560_v2, %v2555_v10  ;;  %v4777_v2 = vld [vmem:[#allocation2 + $0x20] sm:$0xff] }
 0x4da   : > { %v4429_v44 = vpop.f32.mrf.mxu1 }
 0x4db   : > { %4569 = vrot.lane.b32.xlu0 %v4568_v30, %s4832_s11 }
 0x4dc   : > { %v2565_v16 = vpop.f32.mrf.mxu1 }
 0x4de   : > { %v4432_v37 = vpop.f32.mrf.mxu1 }
 0x4df   : > { %4574 = vrot.lane.b32.xlu0 %v4573_v47, %s4833_s22  ;;  %v4778_v37 = vld [vmem:[#allocation2 + $0x10] sm:$0xff] }
 0x4e0   : > { %v2570_v28 = vpop.f32.mrf.mxu1 }
 0x4e1   : > { %v4578_v46 = vpack.i.bf16 %v2570_v28, %v2565_v16 }
 0x4e2   : > { %v4435_v21 = vpop.f32.mrf.mxu1 }
 0x4e3   : > { %4579 = vrot.lane.b32.xlu0 %v4578_v46, %s4832_s11 }
 0x4e7   : > { %2612 = vrot.lane.b32.xlu0 %v2260_v22, %s4833_s22 }
 0x4f8   : > { %v4555_v56 = vpop.permute.xlu0 %4554 }
 0x4f9   : > { %v4557_v15 = vunpack.i.h.bf16 %v4555_v56  ;;  %v4556_v41 = vunpack.i.l.bf16 %v4555_v56 }
 0x4fb   : > { %v2640_v45 = vsel %vm1337_vm1, %v5698_v63, %v4557_v15  ;;  %v2639_v57 = vsel %vm1337_vm1, %v5673_v4, %v4556_v41  ;;  %v4615_v15 = vld [vmem:[%s6054_s29 + $0x70] ss:$8 sps:$4 sm:$0xff]   ;;  %v4617_v41 = vld [vmem:[%s6054_s29 + $0x74] ss:$8 sps:$4 sm:$0xff]  }
 0x4fc   : > { %2982 = vmatprep.subr.bf16.mxu1 %v4617_v41 }
 0x4fd   : > { %2983 = vmatpush1.bf16.msra.mxu1 %v4615_v15 }
 0x500   : > { %v4560_v51 = vpop.permute.xlu0 %4559 }
 0x501   : > { %v4562_v20 = vunpack.i.h.bf16 %v4560_v51  ;;  %v4561_v8 = vunpack.i.l.bf16 %v4560_v51 }
 0x503   : > { %v2642_v63 = vsel %vm1337_vm1, %v5702_v60, %v4562_v20  ;;  %v2641_v23 = vsel %vm1337_vm1, %v5700_v0, %v4561_v8 }
 0x505   : > { %v2575_v38 = vpop.f32.mrf.mxu1 }
 0x506   : > { %2632 = vrot.lane.b32.xlu0 %v2575_v38, %s4832_s11  ;;  %s6057_s11 = sld [smem:[#allocation20_spill]] }
 0x507   : > { %v4438_v48 = vpop.f32.mrf.mxu1 }
 0x508   : > { %v4779_v48 = vld [vmem:[#allocation2 + $0x18] sm:$0xff] }
 0x50c   : > { %s6058_s12 = scalar_lea.vmem %s6057_s11, %s4977_s26  ;;  %s6062_s26 = sld [smem:[#allocation3_spill]] }
 0x512   : > { %p3961_p8 = scmp.ne.s32.totalorder %s6062_s26, 1 }
 0x513   : > { %s6063_s15 = sld [smem:[#allocation27_spill]] (!%p3961_p8) }
 0x52f   : > { %v2593_v60 = vpop.permute.xlu1 %2592 }
 0x530   : > { %v2643_v0 = vsel %vm1337_vm1, %v5706_v27, %v2593_v60  ;;  %v4633_v60 = vld [vmem:[%s6054_s29 + $0x10] ss:$8 sps:$4 sm:$0xff]  }
 0x539   : > { %v4565_v53 = vpop.permute.xlu0 %4564 }
 0x53a   : > { %v4567_v11 = vunpack.i.h.bf16 %v4565_v53  ;;  %v4566_v43 = vunpack.i.l.bf16 %v4565_v53 }
 0x53c   : > { %v2645_v26 = vsel %vm2644_vm3, %v2639_v57, %v4566_v43  ;;  %v2646_v25 = vsel %vm2644_vm3, %v2640_v45, %v4567_v11 }
 0x54d   : > { %v4570_v40 = vpop.permute.xlu0 %4569 }
 0x54e   : > { %v4572_v62 = vunpack.i.h.bf16 %v4570_v40  ;;  %v4571_v58 = vunpack.i.l.bf16 %v4570_v40 }
 0x550   : > { %v2651_v5 = vsel %vm2650_vm4, %v2645_v26, %v4571_v58  ;;  %v2652_v18 = vsel %vm2650_vm4, %v2646_v25, %v4572_v62 }
 0x551   : > { %v2656_v61 = vpack.c.bf16 %v2652_v18, %v2651_v5  ;;  %v4575_v31 = vpop.permute.xlu0 %4574 }
 0x552   : > { %v4577_v42 = vunpack.i.h.bf16 %v4575_v31  ;;  %v4576_v32 = vunpack.i.l.bf16 %v4575_v31 }
 0x553   : > { %4456 = vmatmul.mubr.bf16.vlgmr.msra.gmra.mxu0 %v2656_v61 }
 0x554   : > { %4459 = vmatprep.mubr.msk.bf16.mxu0 %vm4831_vm0, %v4830_v9  ;;  %v2647_v6 = vsel %vm2644_vm3, %v2641_v23, %v4576_v32  ;;  %v2648_v7 = vsel %vm2644_vm3, %v2642_v63, %v4577_v42  ;;  %v4620_v32 = vld [vmem:[%s6054_s29 + $0x64] ss:$8 sps:$4 sm:$0xff]   ;;  %v4623_v63 = vld [vmem:[%s6054_s29 + $0x54] ss:$8 sps:$4 sm:$0xff]   ;;  %v4621_v23 = vld [vmem:[%s6054_s29 + $0x50] ss:$8 sps:$4 sm:$0xff]  }
 0x555   : > { %v4580_v4 = vpop.permute.xlu0 %4579  ;;  %2984 = vmatprep.subr.bf16.mxu1 %v4620_v32  ;;  %v4644_v32 = vld [vmem:[%s5047_s23 + $0x28] sm:$0xff]  }
 0x556   : > { %v4582_v29 = vunpack.i.h.bf16 %v4580_v4  ;;  %v4581_v59 = vunpack.i.l.bf16 %v4580_v4  ;;  %v4618_v4 = vld [vmem:[%s6054_s29 + $0x60] ss:$8 sps:$4 sm:$0xff]  }
 0x557   : > { %2985 = vmatpush1.bf16.msra.mxu1 %v4618_v4  ;;  %v4645_v4 = vld [vmem:[%s5047_s23 + $0x60] sm:$0xff]  }
 0x558   : > { %v2653_v54 = vsel %vm2650_vm4, %v2647_v6, %v4581_v59  ;;  %v2654_v1 = vsel %vm2650_vm4, %v2648_v7, %v4582_v29  ;;  %2986 = vmatprep.subr.bf16.mxu1 %v4623_v63  ;;  %v4626_v29 = vld [vmem:[%s6054_s29 + $0x44] ss:$8 sps:$4 sm:$0xff]   ;;  %v4624_v59 = vld [vmem:[%s6054_s29 + $0x40] ss:$8 sps:$4 sm:$0xff]   ;;  %v4629_v6 = vld [vmem:[%s6054_s29 + $0x34] ss:$8 sps:$4 sm:$0xff]  }
 0x559   : > { %v2657_v36 = vpack.c.bf16 %v2654_v1, %v2653_v54  ;;  %v2613_v50 = vpop.permute.xlu0 %2612  ;;  %v4627_v7 = vld [vmem:[%s6054_s29 + $0x30] ss:$8 sps:$4 sm:$0xff]   ;;  %v4632_v54 = vld [vmem:[%s6054_s29 + $0x24] ss:$8 sps:$4 sm:$0xff]   ;;  %v4630_v1 = vld [vmem:[%s6054_s29 + $0x20] ss:$8 sps:$4 sm:$0xff]  }
 0x55a   : > { %v2649_v33 = vsel %vm2644_vm3, %v2643_v0, %v2613_v50  ;;  %v4638_v50 = vld [vmem:[%s6054_s29 + $0x4] ss:$8 sps:$4 sm:$0xff]  }
 0x55b   : > { %4460 = vmatmul.mubr.bf16.gmra.mxu0 %v2657_v36  ;;  %2987 = vmatpush1.bf16.msra.mxu1 %v4621_v23  ;;  %v4635_v36 = vld [vmem:[%s6054_s29 + $0x14] ss:$8 sps:$4 sm:$0xff]   ;;  %v4646_v63 = vld [vmem:[%s5047_s23 + $0x20] sm:$0xff]  }
 0x55c   : > { %4463 = vmatprep.mubr.msk.bf16.mxu0 %vm4831_vm0, %v4830_v9  ;;  %2988 = vmatprep.subr.bf16.mxu1 %v4626_v29  ;;  %v4647_v23 = vld [vmem:[%s5047_s23 + $0x58] sm:$0xff]  }
 0x55d   : > { %v4648_v29 = vld [vmem:[%s5047_s23 + $0x18] sm:$0xff]  }
 0x55f   : > { %2989 = vmatpush1.bf16.msra.mxu1 %v4624_v59  ;;  %v4649_v59 = vld [vmem:[%s5047_s23 + $0x50] sm:$0xff]  }
 0x560   : > { %2990 = vmatprep.subr.bf16.mxu1 %v4629_v6  ;;  %v4650_v6 = vld [vmem:[%s5047_s23 + $0x10] sm:$0xff]  }
 0x563   : > { %2991 = vmatpush1.bf16.msra.mxu1 %v4627_v7  ;;  %v4651_v7 = vld [vmem:[%s5047_s23 + $0x48] sm:$0xff]  }
 0x564   : > { %2992 = vmatprep.subr.bf16.mxu1 %v4632_v54  ;;  %v4652_v54 = vld [vmem:[%s5047_s23 + $0x8] sm:$0xff]  }
 0x567   : > { %2993 = vmatpush1.bf16.msra.mxu1 %v4630_v1  ;;  %v4653_v1 = vld [vmem:[%s5047_s23 + $0x40] sm:$0xff]  }
 0x568   : > { %2994 = vmatprep.subr.bf16.mxu1 %v4635_v36  ;;  %v4654_v36 = vld [vmem:[%s5047_s23] sm:$0xff]  }
 0x56b   : > { %2995 = vmatpush1.bf16.msra.mxu1 %v4633_v60  ;;  %v2892_v60 = vlaneseq }
 0x56c   : > { %2996 = vmatprep.subr.bf16.mxu1 %v4638_v50 }
 0x56d   : > { %v2893_v50 = vshrl.u32 %v2892_v60, 7 }
 0x578   : > { %v2633_v35 = vpop.permute.xlu0 %2632 }
 0x579   : > { %v2655_v49 = vsel %vm2650_vm4, %v2649_v33, %v2633_v35  ;;  %v4636_v35 = vld [vmem:[%s6054_s29] ss:$8 sps:$4 sm:$0xff]  }
 0x57a   : > { %v2658_v17 = vpack.c.bf16 %v2655_v49, %v2655_v49  ;;  %v4835_v49 = vmov 0   ;;  %2997 = vmatpush1.bf16.msra.mxu1 %v4636_v35  ;;  %v2898_v35 = vsub.s32 1, %v2893_v50 }
 0x57b   : > { %3014 = vmatprep.mubr.bf16.mxu1 %v4835_v49 }
 0x57c   : > { %4464 = vmatmul.mubr.bf16.gmra.mxu0 %v2658_v17 }
 0x613   : > { %v2764_v39 = vpop.f32.mrf.mxu0 }
 0x614   : > { %v2765_v34 = vadd.f32 %v3915_v12, %v2764_v39 }
 0x615   : > { %v4457_v9 = vpop.f32.mrf.mxu0 }
 0x616   : > { %v2786_v24 = vadd.f32 %v4775_v55, %v2765_v34 }
 0x617   : > { %v2767_v13 = vpop.f32.mrf.mxu0 }
 0x618   : > { %v2768_v3 = vadd.f32 %v3915_v12, %v2767_v13  ;;  %2793 = vadd.xlane.f32.xlu0 %v2786_v24 }
 0x619   : > { %v4458_v27 = vpop.f32.mrf.mxu0 }
 0x61a   : > { %v2787_v22 = vadd.f32 %v4776_v52, %v2768_v3 }
 0x61b   : > { %v2772_v19 = vpop.f32.mrf.mxu0 }
 0x61c   : > { %v2773_v10 = vadd.f32 %v3915_v12, %v2772_v19  ;;  %2795 = vadd.xlane.f32.xlu1 %v2787_v22 }
 0x61d   : > { %v4461_v14 = vpop.f32.mrf.mxu0 }
 0x61e   : > { %v2788_v30 = vadd.f32 %v4777_v2, %v2773_v10 }
 0x61f   : > { %v2775_v44 = vpop.f32.mrf.mxu0 }
 0x620   : > { %v2776_v16 = vadd.f32 %v3915_v12, %v2775_v44  ;;  %2797 = vadd.xlane.f32.xlu0 %v2788_v30 }
 0x621   : > { %v4462_v47 = vpop.f32.mrf.mxu0 }
 0x622   : > { %v2789_v28 = vadd.f32 %v4778_v37, %v2776_v16  ;;  %v3925_v37 = vld [vmem:[%s6058_s12] ss:$0 sm:$0xff] }
 0x624   : > { %2799 = vadd.xlane.f32.xlu0 %v2789_v28 }
 0x63c   : > { %v2780_v46 = vpop.f32.mrf.mxu0 }
 0x63d   : > { %v2781_v21 = vadd.f32 %v3915_v12, %v2780_v46 }
 0x63e   : > { %v4465_v38 = vpop.f32.mrf.mxu0 }
 0x63f   : > { %v2790_v56 = vadd.f32 %v4779_v48, %v2781_v21 }
 0x640   : > { %v2783_v51 = vpop.f32.mrf.mxu0 }
 0x641   : > { %2801 = vadd.xlane.f32.xlu0 %v2790_v56 }
 0x642   : > { %v4466_v53 = vpop.f32.mrf.mxu0 }
 0x6a1   : > { %v2794_v11 = vpop.xlane.xlu0 %2793 }
 0x6a2   : > { %v2804_v43 = vmul.f32 0.0078125, %v2794_v11 }
 0x6a4   : > { %v5763_v40 = vsub.f32 %v2786_v24, %v2804_v43 }
 0x6a5   : > { %v2796_v45 = vpop.xlane.xlu1 %2795 }
 0x6a6   : > { %v2805_v57 = vmul.f32 0.0078125, %v2796_v45  ;;  %v2814_v62 = vmul.f32 %v5763_v40, %v5763_v40 }
 0x6a8   : > { %v5767_v58 = vsub.f32 %v2787_v22, %v2805_v57  ;;  %2819 = vadd.xlane.f32.xlu1 %v2814_v62 }
 0x6a9   : > { %v2798_v26 = vpop.xlane.xlu0 %2797 }
 0x6aa   : > { %v2806_v25 = vmul.f32 0.0078125, %v2798_v26  ;;  %v2815_v5 = vmul.f32 %v5767_v58, %v5767_v58 }
 0x6ac   : > { %v5771_v18 = vsub.f32 %v2788_v30, %v2806_v25  ;;  %2821 = vadd.xlane.f32.xlu0 %v2815_v5  ;;  %v3924_v30 = vld [vmem:[%s6056_s6] ss:$0 sm:$0xff] }
 0x6ad   : > { %v2800_v61 = vpop.xlane.xlu0 %2799 }
 0x6ae   : > { %v2807_v31 = vmul.f32 0.0078125, %v2800_v61  ;;  %v2816_v20 = vmul.f32 %v5771_v18, %v5771_v18  ;;  %v4639_v61 = vld [vmem:[%s5047_s23 + $0x78] sm:$0xff]  }
 0x6af   : > { %4112 = vmatprep.subr.bf16.mxu0 %v4639_v61  ;;  %4487 = vmatprep.subr.bf16.mxu1 %v4639_v61 }
 0x6b0   : > { %v5775_v8 = vsub.f32 %v2789_v28, %v2807_v31  ;;  %2823 = vadd.xlane.f32.xlu1 %v2816_v20  ;;  %v4640_v31 = vld [vmem:[%s5047_s23 + $0x38] sm:$0xff]   ;;  %v4641_v20 = vld [vmem:[%s5047_s23 + $0x70] sm:$0xff]  }
 0x6b1   : > { %4113 = vmatpush3.bf16.msra.mxu0 %v4640_v31 }
 0x6b2   : > { %v2817_v42 = vmul.f32 %v5775_v8, %v5775_v8  ;;  %4114 = vmatprep.subr.bf16.mxu0 %v4641_v20 }
 0x6b4   : > { %2825 = vadd.xlane.f32.xlu0 %v2817_v42  ;;  %v4643_v42 = vld [vmem:[%s5047_s23 + $0x68] sm:$0xff]  }
 0x6ca   : > { %v2802_v0 = vpop.xlane.xlu0 %2801 }
 0x6cb   : > { %v2808_v33 = vmul.f32 0.0078125, %v2802_v0  ;;  %v2894_v0 = vsub.s32 0, %v2893_v50 }
 0x6cd   : > { %v2813_v17 = vsub.f32 %v2790_v56, %v2808_v33  ;;  %v2890_v33 = vld [vmem:[%s5042_s14] sm:$0x3] }
 0x6cf   : > { %v2818_v12 = vmul.f32 %v2813_v17, %v2813_v17 }
 0x6d1   : > { %2827 = vadd.xlane.f32.xlu1 %v2818_v12 }
 0x731   : > { %v2820_v39 = vpop.xlane.xlu1 %2819 }
 0x732   : > { %v2829_v34 = vmul.f32 0.0078125, %v2820_v39 }
 0x734   : > { %v2834_v9 = vadd.f32 1e-05, %v2829_v34 }
 0x735   : > { %v2822_v55 = vpop.xlane.xlu0 %2821 }
 0x736   : > { %4735 = vrsqrt.f32 %v2834_v9  ;;  %v2830_v24 = vmul.f32 0.0078125, %v2822_v55 }
 0x738   : > { %v2835_v13 = vadd.f32 1e-05, %v2830_v24 }
 0x739   : > { %v2824_v3 = vpop.xlane.xlu1 %2823 }
 0x73a   : > { %4737 = vrsqrt.f32 %v2835_v13  ;;  %v2831_v27 = vmul.f32 0.0078125, %v2824_v3 }
 0x73c   : > { %v2836_v52 = vadd.f32 1e-05, %v2831_v27 }
 0x73d   : > { %v2826_v22 = vpop.xlane.xlu0 %2825 }
 0x73e   : > { %4739 = vrsqrt.f32 %v2836_v52  ;;  %v2832_v19 = vmul.f32 0.0078125, %v2826_v22 }
 0x740   : > { %v2837_v10 = vadd.f32 1e-05, %v2832_v19 }
 0x742   : > { %4741 = vrsqrt.f32 %v2837_v10 }
 0x743   : > { %v4736_v14 = vpop.eup %4735 }
 0x744   : > { %v2844_v2 = vmul.f32 %v4736_v14, %v5763_v40 }
 0x746   : > { %v2855_v47 = vmul.f32 %v3924_v30, %v2844_v2 }
 0x747   : > { %v4738_v44 = vpop.eup %4737 }
 0x748   : > { %v2845_v16 = vmul.f32 %v4738_v44, %v5767_v58  ;;  %v5805_v21 = vadd.f32 %v3925_v37, %v2855_v47 }
 0x74a   : > { %v2856_v28 = vmul.f32 %v3924_v30, %v2845_v16 }
 0x74b   : > { %v4740_v46 = vpop.eup %4739 }
 0x74c   : > { %v5807_v38 = vadd.f32 %v3925_v37, %v2856_v28  ;;  %v2846_v48 = vmul.f32 %v4740_v46, %v5771_v18 }
 0x74e   : > { %v2871_v56 = vpack.c.bf16 %v5807_v38, %v5805_v21  ;;  %v2857_v15 = vmul.f32 %v3924_v30, %v2846_v48 }
 0x74f   : > { %v4742_v51 = vpop.eup %4741 }
 0x750   : > { %3015 = vmatmul.mubr.bf16.vlgmr.msra.gmra.mxu1 %v2871_v56  ;;  %v2847_v53 = vmul.f32 %v4742_v51, %v5775_v8  ;;  %v5813_v11 = vadd.f32 %v3925_v37, %v2857_v15  ;;  %v4642_v8 = vld [vmem:[%s5047_s23 + $0x30] sm:$0xff]   ;;  %s6064_s23 = sld [smem:[#allocation28_spill]] (!%p3961_p8) }
 0x751   : > { %3024 = vmatprep.mubr.bf16.mxu1 %v4835_v49  ;;  %4495 = vmatpush3.bf16.msra.mxu1 %v4640_v31 }
 0x752   : > { %v2858_v41 = vmul.f32 %v3924_v30, %v2847_v53  ;;  %4488 = vmatprep.subr.bf16.mxu1 %v4641_v20  ;;  %4115 = vmatpush3.bf16.msra.mxu0 %v4642_v8 }
 0x753   : > { %4116 = vmatprep.subr.bf16.mxu0 %v4643_v42 }
 0x754   : > { %v5815_v43 = vadd.f32 %v3925_v37, %v2858_v41 }
 0x755   : > { %4496 = vmatpush3.bf16.msra.mxu1 %v4642_v8 }
 0x756   : > { %v2872_v40 = vpack.c.bf16 %v5815_v43, %v5813_v11  ;;  %4489 = vmatprep.subr.bf16.mxu1 %v4643_v42  ;;  %4117 = vmatpush3.bf16.msra.mxu0 %v4644_v32 }
 0x757   : > { %4118 = vmatprep.subr.bf16.mxu0 %v4645_v4 }
 0x758   : > { %3025 = vmatmul.mubr.bf16.gmra.mxu1 %v2872_v40 }
 0x759   : > { %3034 = vmatprep.mubr.bf16.mxu1 %v4835_v49  ;;  %4497 = vmatpush3.bf16.msra.mxu1 %v4644_v32  ;;  %v5840_v49 = vrot.slane %v2890_v33, %v2894_v0 }
 0x75a   : > { %v2828_v45 = vpop.xlane.xlu1 %2827  ;;  %4490 = vmatprep.subr.bf16.mxu1 %v4645_v4  ;;  %4119 = vmatpush3.bf16.msra.mxu0 %v4646_v63 }
 0x75b   : > { %v2833_v57 = vmul.f32 0.0078125, %v2828_v45  ;;  %4120 = vmatprep.subr.bf16.mxu0 %v4647_v23 }
 0x75d   : > { %v2838_v62 = vadd.f32 1e-05, %v2833_v57  ;;  %4498 = vmatpush3.bf16.msra.mxu1 %v4646_v63 }
 0x75e   : > { %4491 = vmatprep.subr.bf16.mxu1 %v4647_v23  ;;  %4121 = vmatpush3.bf16.msra.mxu0 %v4648_v29 }
 0x75f   : > { %4743 = vrsqrt.f32 %v2838_v62  ;;  %4122 = vmatprep.subr.bf16.mxu0 %v4649_v59 }
 0x761   : > { %4499 = vmatpush3.bf16.msra.mxu1 %v4648_v29 }
 0x762   : > { %4492 = vmatprep.subr.bf16.mxu1 %v4649_v59  ;;  %4123 = vmatpush3.bf16.msra.mxu0 %v4650_v6 }
 0x763   : > { %4124 = vmatprep.subr.bf16.mxu0 %v4651_v7 }
 0x765   : > { %4500 = vmatpush3.bf16.msra.mxu1 %v4650_v6 }
 0x766   : > { %4493 = vmatprep.subr.bf16.mxu1 %v4651_v7  ;;  %4125 = vmatpush3.bf16.msra.mxu0 %v4652_v54 }
 0x767   : > { %4126 = vmatprep.subr.bf16.mxu0 %v4653_v1 }
 0x769   : > { %4501 = vmatpush3.bf16.msra.mxu1 %v4652_v54 }
 0x76a   : > { %4494 = vmatprep.subr.bf16.mxu1 %v4653_v1  ;;  %4127 = vmatpush3.bf16.msra.mxu0 %v4654_v36 }
 0x76c   : > { %v4744_v58 = vpop.eup %4743 }
 0x76d   : > { %v2848_v26 = vmul.f32 %v4744_v58, %v2813_v17  ;;  %4502 = vmatpush3.bf16.msra.mxu1 %v4654_v36  ;;  %v5842_v17 = vrot.slane %v2890_v33, %v2898_v35 }
 0x76f   : > { %v2859_v25 = vmul.f32 %v3924_v30, %v2848_v26 }
 0x771   : > { %v5819_v5 = vadd.f32 %v3925_v37, %v2859_v25 }
 0x773   : > { %v2873_v18 = vpack.c.bf16 %v5819_v5, %v5819_v5 }
 0x775   : > { %3035 = vmatmul.mubr.bf16.gmra.mxu1 %v2873_v18 }
 0x810   : > { %v3016_v12 = vpop.f32.mrf.mxu1 }
 0x811   : > { %v5845_v39 = vadd.f32 %v3016_v12, %v5840_v49 }
 0x812   : > { %v3018_v34 = vpop.f32.mrf.mxu1 }
 0x813   : > { %v3043_v9 = vmul.f32 %v5845_v39, %v5845_v39  ;;  %v5850_v55 = vadd.f32 %v3018_v34, %v5842_v17 }
 0x814   : > { %v3020_v24 = vpop.f32.mrf.mxu1 }
 0x815   : > { %v3053_v13 = vmul.f32 %v3043_v9, %v5845_v39  ;;  %v3044_v3 = vmul.f32 %v5850_v55, %v5850_v55  ;;  %v5856_v27 = vadd.f32 %v3020_v24, %v5840_v49 }
 0x816   : > { %v3022_v52 = vpop.f32.mrf.mxu1 }
 0x817   : > { %v3063_v22 = vmul.f32 0.044715, %v3053_v13  ;;  %v3054_v19 = vmul.f32 %v3044_v3, %v5850_v55  ;;  %v3045_v10 = vmul.f32 %v5856_v27, %v5856_v27  ;;  %v5862_v14 = vadd.f32 %v3022_v52, %v5842_v17 }
 0x818   : > { %v3026_v2 = vpop.f32.mrf.mxu1 }
 0x819   : > { %v3073_v30 = vadd.f32 %v3063_v22, %v5845_v39  ;;  %v3064_v44 = vmul.f32 0.044715, %v3054_v19  ;;  %v3055_v16 = vmul.f32 %v3045_v10, %v5856_v27  ;;  %v3046_v47 = vmul.f32 %v5862_v14, %v5862_v14 }
 0x81a   : > { %v5869_v37 = vadd.f32 %v3026_v2, %v5840_v49  ;;  %v3028_v28 = vpop.f32.mrf.mxu1 }
 0x81b   : > { %v3083_v46 = vmul.f32 0.7978846, %v3073_v30  ;;  %v3074_v48 = vadd.f32 %v3064_v44, %v5850_v55  ;;  %v3065_v56 = vmul.f32 0.044715, %v3055_v16  ;;  %v3056_v51 = vmul.f32 %v3046_v47, %v5862_v14 }
 0x81c   : > { %v3047_v53 = vmul.f32 %v5869_v37, %v5869_v37  ;;  %v5876_v15 = vadd.f32 %v3028_v28, %v5842_v17  ;;  %v3030_v41 = vpop.f32.mrf.mxu1 }
 0x81d   : > { %v3084_v40 = vmul.f32 0.7978846, %v3074_v48  ;;  %v3075_v45 = vadd.f32 %v3065_v56, %v5856_v27  ;;  %v3066_v57 = vmul.f32 0.044715, %v3056_v51  ;;  %4745 = vtanh.f32 %v3083_v46 }
 0x81e   : > { %v3057_v62 = vmul.f32 %v3047_v53, %v5869_v37  ;;  %v3048_v58 = vmul.f32 %v5876_v15, %v5876_v15  ;;  %v5883_v26 = vadd.f32 %v3030_v41, %v5840_v49  ;;  %v3032_v25 = vpop.f32.mrf.mxu1 }
 0x81f   : > { %4747 = vtanh.f32 %v3084_v40  ;;  %v3085_v18 = vmul.f32 0.7978846, %v3075_v45  ;;  %v3076_v61 = vadd.f32 %v3066_v57, %v5862_v14  ;;  %v5887_v31 = vadd.f32 %v3032_v25, %v5842_v17 }
 0x820   : > { %v3067_v20 = vmul.f32 0.044715, %v3057_v62  ;;  %v3058_v8 = vmul.f32 %v3048_v58, %v5876_v15  ;;  %v3049_v42 = vmul.f32 %v5883_v26, %v5883_v26 }
 0x821   : > { %4749 = vtanh.f32 %v3085_v18  ;;  %v3086_v32 = vmul.f32 0.7978846, %v3076_v61  ;;  %v3050_v4 = vmul.f32 %v5887_v31, %v5887_v31 }
 0x822   : > { %v3077_v63 = vadd.f32 %v3067_v20, %v5869_v37  ;;  %v3068_v23 = vmul.f32 0.044715, %v3058_v8  ;;  %v3059_v29 = vmul.f32 %v3049_v42, %v5883_v26 }
 0x823   : > { %4751 = vtanh.f32 %v3086_v32  ;;  %v3060_v59 = vmul.f32 %v3050_v4, %v5887_v31 }
 0x824   : > { %v3087_v6 = vmul.f32 0.7978846, %v3077_v63  ;;  %v3078_v7 = vadd.f32 %v3068_v23, %v5876_v15  ;;  %v3069_v54 = vmul.f32 0.044715, %v3059_v29 }
 0x825   : > { %v3070_v1 = vmul.f32 0.044715, %v3060_v59 }
 0x826   : > { %4753 = vtanh.f32 %v3087_v6  ;;  %v3088_v36 = vmul.f32 0.7978846, %v3078_v7  ;;  %v3079_v60 = vadd.f32 %v3069_v54, %v5883_v26 }
 0x827   : > { %v3080_v50 = vadd.f32 %v3070_v1, %v5887_v31 }
 0x828   : > { %4755 = vtanh.f32 %v3088_v36  ;;  %v3089_v0 = vmul.f32 0.7978846, %v3079_v60 }
 0x829   : > { %v3090_v33 = vmul.f32 0.7978846, %v3080_v50 }
 0x82a   : > { %4757 = vtanh.f32 %v3089_v0  ;;  %v4746_v35 = vpop.eup %4745 }
 0x82b   : > { %4759 = vtanh.f32 %v3090_v33  ;;  %v3103_v24 = vadd.f32 1.0, %v4746_v35 }
 0x82c   : > { %v4748_v12 = vpop.eup %4747 }
 0x82d   : > { %v3104_v34 = vadd.f32 1.0, %v4748_v12  ;;  %v3113_v10 = vmul.f32 0.5, %v3103_v24  ;;  %v3942_v24 = vld [vmem:[%s912_s25] ss:$0 sm:$0xff] }
 0x82e   : > { %v4750_v9 = vpop.eup %4749 }
 0x82f   : > { %v3105_v13 = vadd.f32 1.0, %v4750_v9  ;;  %v3114_v19 = vmul.f32 0.5, %v3104_v34  ;;  %v3123_v56 = vmul.f32 %v3113_v10, %v5845_v39 }
 0x830   : > { %v4752_v3 = vpop.eup %4751 }
 0x831   : > { %v3115_v52 = vmul.f32 0.5, %v3105_v13  ;;  %v3106_v22 = vadd.f32 1.0, %v4752_v3  ;;  %v3124_v46 = vmul.f32 %v3114_v19, %v5850_v55 }
 0x833   : > { %v4754_v2 = vpop.eup %4753  ;;  %v3116_v30 = vmul.f32 0.5, %v3106_v22  ;;  %v3125_v44 = vmul.f32 %v3115_v52, %v5856_v27 }
 0x834   : > { %v3107_v41 = vadd.f32 1.0, %v4754_v2 }
 0x835   : > { %v3036_v16 = vpop.f32.mrf.mxu1  ;;  %v4756_v47 = vpop.eup %4755  ;;  %v3126_v48 = vmul.f32 %v3116_v30, %v5862_v14  ;;  %v3133_v27 = vpack.c.bf16 %v3125_v44, %v3123_v56 }
 0x836   : > { %v3037_v28 = vadd.f32 %v3036_v16, %v5840_v49  ;;  %v3108_v53 = vadd.f32 1.0, %v4756_v47  ;;  %v3117_v39 = vmul.f32 0.5, %v3107_v41 }
 0x837   : > { %v3038_v51 = vpop.f32.mrf.mxu1  ;;  %v4758_v40 = vpop.eup %4757  ;;  %v3134_v62 = vpack.c.bf16 %v3126_v48, %v3124_v46 }
 0x838   : > { %v3051_v45 = vmul.f32 %v3037_v28, %v3037_v28  ;;  %v3039_v57 = vadd.f32 %v3038_v51, %v5842_v17  ;;  %v4760_v58 = vpop.eup %4759  ;;  %v3109_v18 = vadd.f32 1.0, %v4758_v40  ;;  %v3118_v20 = vmul.f32 0.5, %v3108_v53 }
 0x839   : > { %v3040_v25 = vpop.f32.mrf.mxu1  ;;  %3306 = vmatprep.mubr.bf16.mxu0 %v3134_v62  ;;  %v3110_v55 = vadd.f32 1.0, %v4760_v58  ;;  %v3127_v6 = vmul.f32 %v3117_v39, %v5869_v37 }
 0x83a   : > { %v3061_v61 = vmul.f32 %v3051_v45, %v3037_v28  ;;  %v3052_v49 = vmul.f32 %v3039_v57, %v3039_v57  ;;  %3307 = vmatmul.mubr.bf16.vlgmr.msra.gmra.mxu0 %v3133_v27  ;;  %v3119_v8 = vmul.f32 0.5, %v3109_v18  ;;  %v3128_v29 = vmul.f32 %v3118_v20, %v5876_v15 }
 0x83b   : > { %v3041_v14 = vpop.f32.mrf.mxu1  ;;  %v3120_v4 = vmul.f32 0.5, %v3110_v55 }
 0x83c   : > { %v3071_v42 = vmul.f32 0.044715, %v3061_v61  ;;  %v3062_v32 = vmul.f32 %v3052_v49, %v3039_v57  ;;  %v3129_v63 = vmul.f32 %v3119_v8, %v5883_v26 }
 0x83d   : > { %v3130_v59 = vmul.f32 %v3120_v4, %v5887_v31 }
 0x83e   : > { %v3081_v17 = vadd.f32 %v3071_v42, %v3037_v28  ;;  %v3072_v23 = vmul.f32 0.044715, %v3062_v32  ;;  %v3135_v36 = vpack.c.bf16 %v3129_v63, %v3127_v6 }
 0x83f   : > { %v3136_v1 = vpack.c.bf16 %v3130_v59, %v3128_v29 }
 0x840   : > { %v3091_v7 = vmul.f32 0.7978846, %v3081_v17  ;;  %v3082_v54 = vadd.f32 %v3072_v23, %v3039_v57 }
 0x841   : > { %3314 = vmatprep.mubr.bf16.mxu0 %v3136_v1 }
 0x842   : > { %4761 = vtanh.f32 %v3091_v7  ;;  %v3092_v60 = vmul.f32 0.7978846, %v3082_v54  ;;  %3315 = vmatmul.mubr.bf16.gmra.mxu0 %v3135_v36 }
 0x844   : > { %4763 = vtanh.f32 %v3092_v60 }
 0x84f   : > { %v4762_v50 = vpop.eup %4761 }
 0x850   : > { %v3111_v26 = vadd.f32 1.0, %v4762_v50 }
 0x851   : > { %v4764_v0 = vpop.eup %4763 }
 0x852   : > { %v3121_v33 = vmul.f32 0.5, %v3111_v26  ;;  %v3112_v35 = vadd.f32 1.0, %v4764_v0 }
 0x854   : > { %v3122_v15 = vmul.f32 0.5, %v3112_v35  ;;  %v3131_v12 = vmul.f32 %v3121_v33, %v3037_v28 }
 0x856   : > { %v3132_v31 = vmul.f32 %v3122_v15, %v3039_v57  ;;  %v3137_v37 = vpack.c.bf16 %v3131_v12, %v3131_v12 }
 0x858   : > { %v3138_v34 = vpack.c.bf16 %v3132_v31, %v3132_v31  ;;  %v3959_v31 = vld [vmem:[%s915_s16] ss:$0 sm:$0xff] }
 0x85a   : > { %3322 = vmatprep.mubr.bf16.mxu1 %v3138_v34 }
 0x85b   : > { %3323 = vmatmul.mubr.bf16.vlgmr.msra.gmra.mxu1 %v3137_v37  ;;  %v3960_v37 = vld [vmem:[%s918_s13] ss:$0 sm:$0xff] }
 0x8fa   : > { %v4128_v9 = vpop.f32.mrf.mxu0 }
 0x8fc   : > { %v4129_v13 = vpop.f32.mrf.mxu0 }
 0x8fd   : > { %v4130_v3 = vadd.f32 %v4129_v13, %v4128_v9 }
 0x8fe   : > { %v4131_v52 = vpop.f32.mrf.mxu0 }
 0x8ff   : > { %v3309_v22 = vadd.f32 %v4130_v3, %v3942_v24 }
 0x900   : > { %v4132_v19 = vpop.f32.mrf.mxu0 }
 0x901   : > { %v4133_v10 = vadd.f32 %v4132_v19, %v4131_v52  ;;  %v3330_v2 = vadd.f32 %v3309_v22, %v5805_v21 }
 0x902   : > { %v4134_v30 = vpop.f32.mrf.mxu0 }
 0x903   : > { %v3312_v44 = vadd.f32 %v4133_v10, %v3942_v24  ;;  %3337 = vadd.xlane.f32.xlu0 %v3330_v2 }
 0x904   : > { %v4135_v16 = vpop.f32.mrf.mxu0 }
 0x905   : > { %v4136_v47 = vadd.f32 %v4135_v16, %v4134_v30  ;;  %v3331_v28 = vadd.f32 %v3312_v44, %v5807_v38 }
 0x906   : > { %v4137_v46 = vpop.f32.mrf.mxu0 }
 0x907   : > { %v3317_v48 = vadd.f32 %v4136_v47, %v3942_v24  ;;  %3339 = vadd.xlane.f32.xlu1 %v3331_v28 }
 0x908   : > { %v4138_v56 = vpop.f32.mrf.mxu0 }
 0x909   : > { %v4139_v51 = vadd.f32 %v4138_v56, %v4137_v46  ;;  %v3332_v53 = vadd.f32 %v3317_v48, %v5813_v11 }
 0x90b   : > { %v3320_v41 = vadd.f32 %v4139_v51, %v3942_v24  ;;  %3341 = vadd.xlane.f32.xlu0 %v3332_v53 }
 0x90d   : > { %v3333_v40 = vadd.f32 %v3320_v41, %v5815_v43 }
 0x90f   : > { %3343 = vadd.xlane.f32.xlu1 %v3333_v40 }
 0x91b   : > { %v4140_v21 = vpop.f32.mrf.mxu1 }
 0x91d   : > { %v4141_v45 = vpop.f32.mrf.mxu1 }
 0x91e   : > { %v4142_v57 = vadd.f32 %v4141_v45, %v4140_v21 }
 0x91f   : > { %v4143_v62 = vpop.f32.mrf.mxu1 }
 0x920   : > { %v3325_v58 = vadd.f32 %v4142_v57, %v3942_v24 }
 0x921   : > { %v4144_v27 = vpop.f32.mrf.mxu1 }
 0x922   : > { %v3334_v38 = vadd.f32 %v3325_v58, %v5819_v5 }
 0x924   : > { %3345 = vadd.xlane.f32.xlu0 %v3334_v38 }
 0x98c   : > { %v3338_v25 = vpop.xlane.xlu0 %3337 }
 0x98d   : > { %v3347_v18 = vmul.f32 0.0078125, %v3338_v25 }
 0x98f   : > { %v3352_v61 = vsub.f32 %v3330_v2, %v3347_v18 }
 0x990   : > { %v3340_v49 = vpop.xlane.xlu1 %3339 }
 0x991   : > { %v3348_v55 = vmul.f32 0.0078125, %v3340_v49  ;;  %v3357_v11 = vmul.f32 %v3352_v61, %v3352_v61 }
 0x993   : > { %v3353_v20 = vsub.f32 %v3331_v28, %v3348_v55  ;;  %3362 = vadd.xlane.f32.xlu1 %v3357_v11 }
 0x994   : > { %v3342_v14 = vpop.xlane.xlu0 %3341 }
 0x995   : > { %v3349_v43 = vmul.f32 0.0078125, %v3342_v14  ;;  %v3358_v39 = vmul.f32 %v3353_v20, %v3353_v20 }
 0x997   : > { %v3354_v8 = vsub.f32 %v3332_v53, %v3349_v43  ;;  %3364 = vadd.xlane.f32.xlu0 %v3358_v39 }
 0x998   : > { %v3344_v42 = vpop.xlane.xlu1 %3343 }
 0x999   : > { %v3350_v32 = vmul.f32 0.0078125, %v3344_v42  ;;  %v3359_v4 = vmul.f32 %v3354_v8, %v3354_v8 }
 0x99b   : > { %v3355_v63 = vsub.f32 %v3333_v40, %v3350_v32  ;;  %3366 = vadd.xlane.f32.xlu1 %v3359_v4 }
 0x99d   : > { %v3360_v5 = vmul.f32 %v3355_v63, %v3355_v63 }
 0x99f   : > { %3368 = vadd.xlane.f32.xlu0 %v3360_v5 }
 0x9ad   : > { %v3346_v17 = vpop.xlane.xlu0 %3345 }
 0x9ae   : > { %v3351_v23 = vmul.f32 0.0078125, %v3346_v17 }
 0x9b0   : > { %v3356_v29 = vsub.f32 %v3334_v38, %v3351_v23 }
 0x9b2   : > { %v3361_v59 = vmul.f32 %v3356_v29, %v3356_v29 }
 0x9b4   : > { %3370 = vadd.xlane.f32.xlu1 %v3361_v59 }
 0xa1c   : > { %v3363_v6 = vpop.xlane.xlu1 %3362 }
 0xa1d   : > { %v3372_v7 = vmul.f32 0.0078125, %v3363_v6 }
 0xa1f   : > { %v3377_v54 = vadd.f32 1e-05, %v3372_v7 }
 0xa20   : > { %v3365_v1 = vpop.xlane.xlu0 %3364 }
 0xa21   : > { %4765 = vrsqrt.f32 %v3377_v54  ;;  %v3373_v36 = vmul.f32 0.0078125, %v3365_v1 }
 0xa23   : > { %v3378_v60 = vadd.f32 1e-05, %v3373_v36 }
 0xa24   : > { %v3367_v50 = vpop.xlane.xlu1 %3366 }
 0xa25   : > { %4767 = vrsqrt.f32 %v3378_v60  ;;  %v3374_v26 = vmul.f32 0.0078125, %v3367_v50 }
 0xa27   : > { %v3379_v0 = vadd.f32 1e-05, %v3374_v26 }
 0xa28   : > { %v3369_v33 = vpop.xlane.xlu0 %3368 }
 0xa29   : > { %4769 = vrsqrt.f32 %v3379_v0  ;;  %v3375_v35 = vmul.f32 0.0078125, %v3369_v33 }
 0xa2b   : > { %v3380_v15 = vadd.f32 1e-05, %v3375_v35 }
 0xa2d   : > { %4771 = vrsqrt.f32 %v3380_v15 }
 0xa2e   : > { %v4766_v12 = vpop.eup %4765 }
 0xa2f   : > { %v3387_v34 = vmul.f32 %v4766_v12, %v3352_v61 }
 0xa31   : > { %v3398_v9 = vmul.f32 %v3959_v31, %v3387_v34 }
 0xa32   : > { %v4768_v24 = vpop.eup %4767 }
 0xa33   : > { %v3409_v13 = vadd.f32 %v3960_v37, %v3398_v9  ;;  %v3388_v3 = vmul.f32 %v4768_v24, %v3353_v20 }
 0xa35   : > { %3414 = vst [vmem:[#allocation2 + $0x8] sm:$0xff] %v3409_v13  ;;  %v3399_v52 = vmul.f32 %v3959_v31, %v3388_v3 }
 0xa36   : > { %v4770_v22 = vpop.eup %4769 }
 0xa37   : > { %v3410_v19 = vadd.f32 %v3960_v37, %v3399_v52  ;;  %v3389_v10 = vmul.f32 %v4770_v22, %v3354_v8 }
 0xa39   : > { %3415 = vst [vmem:[#allocation2] sm:$0xff] %v3410_v19  ;;  %v3400_v2 = vmul.f32 %v3959_v31, %v3389_v10 }
 0xa3a   : > { %v4772_v30 = vpop.eup %4771 }
 0xa3b   : > { %v3411_v44 = vadd.f32 %v3960_v37, %v3400_v2  ;;  %v3390_v16 = vmul.f32 %v4772_v30, %v3355_v63 }
 0xa3d   : > { %v3371_v47 = vpop.xlane.xlu1 %3370  ;;  %3416 = vst [vmem:[#allocation2 + $0x20] sm:$0xff] %v3411_v44  ;;  %v3401_v28 = vmul.f32 %v3959_v31, %v3390_v16 }
 0xa3e   : > { %v3376_v46 = vmul.f32 0.0078125, %v3371_v47 }
 0xa3f   : > { %v3412_v48 = vadd.f32 %v3960_v37, %v3401_v28 }
 0xa40   : > { %v3381_v56 = vadd.f32 1e-05, %v3376_v46 }
 0xa41   : > { %3417 = vst [vmem:[#allocation2 + $0x10] sm:$0xff] %v3412_v48 }
 0xa42   : > { %4773 = vrsqrt.f32 %v3381_v56 }
 0xa4f   : > { %v4774_v51 = vpop.eup %4773 }
 0xa50   : > { %v3391_v53 = vmul.f32 %v4774_v51, %v3356_v29 }
 0xa52   : > { %v3402_v41 = vmul.f32 %v3959_v31, %v3391_v53  ;;  %3422 = sbr.rel (%p3961_p8) target bundleno = 2890 (0xb4a), region = 108 }
 0xa54   : > { %v3413_v40 = vadd.f32 %v3960_v37, %v3402_v41 }
 0xa56   : > { %3418 = vst [vmem:[#allocation2 + $0x18] sm:$0xff] %v3413_v40 }
 0xa57   : > { %v4780_v21 = vld [vmem:[%s6063_s15 + $0x38] sm:$0xff]   ;;  %v4836_v45 = vmov 0.0   ;;  %v4781_v57 = vld [vmem:[%s6063_s15 + $0x30] sm:$0xff]   ;;  %vm4837_vm5 = vmmov 0   ;;  %v3424_v62 = vpack.c.bf16 %v3410_v19, %v3410_v19  ;;  %v4782_v58 = vld [vmem:[%s6063_s15 + $0x28] sm:$0xff]   ;;  %v3425_v27 = vpack.c.bf16 %v3411_v44, %v3411_v44 }
 0xa58   : > { %4467 = vmatprep.subr.bf16.mxu0 %v4836_v45  ;;  %4483 = vmatprep.mubr.msk.bf16.mxu0 %vm4837_vm5, %v4836_v45  ;;  %v3423_v38 = vpack.c.bf16 %v3409_v13, %v3409_v13  ;;  %v4783_v18 = vld [vmem:[%s6063_s15 + $0x20] sm:$0xff]   ;;  %v3426_v61 = vpack.c.bf16 %v3412_v48, %v3412_v48  ;;  %v4784_v20 = vld [vmem:[%s6063_s15 + $0x18] sm:$0xff]   ;;  %v3427_v14 = vpack.c.bf16 %v3413_v40, %v3413_v40  ;;  %vm3462_vm6 = vcmask 1041409   ;;  %v4785_v42 = vld [vmem:[%s6063_s15 + $0x10] sm:$0xff]  }
 0xa59   : > { %4468 = vmatpush3.bf16.msra.mxu0 %v4780_v21  ;;  %v3457_v25 = vunpack.c.l.b16 %v3424_v62  ;;  %v3458_v49 = vunpack.c.l.b16 %v3425_v27  ;;  %vm3465_vm7 = vcmask 1042434   ;;  %vm3468_vm8 = vcmask 1043459   ;;  %v4786_v5 = vld [vmem:[%s6063_s15 + $0x8] sm:$0xff]   ;;  %v4787_v29 = vld [vmem:[%s6063_s15] sm:$0xff]  }
 0xa5a   : > { %4469 = vmatprep.subr.bf16.mxu0 %v4836_v45  ;;  %v3456_v55 = vunpack.c.l.b16 %v3423_v38  ;;  %v3459_v43 = vunpack.c.l.b16 %v3426_v61  ;;  %v3460_v32 = vunpack.c.l.b16 %v3427_v14  ;;  %vm3471_vm9 = vcmask 1044484   ;;  %v3962_v7 = vld [vmem:[%s6064_s23] ss:$0 sm:$0xff] }
 0xa5b   : > { %v3461_v11 = vrot.slane %v3457_v25, 7  ;;  %v3464_v39 = vrot.slane %v3458_v49, 6 }
 0xa5c   : > { %v3467_v4 = vrot.slane %v3459_v43, 5  ;;  %v3470_v17 = vrot.slane %v3460_v32, 4 }
 0xa5d   : > { %4470 = vmatpush3.bf16.msra.mxu0 %v4781_v57  ;;  %v3463_v8 = vsel %vm3462_vm6, %v3461_v11, %v3456_v55 }
 0xa5e   : > { %4471 = vmatprep.subr.bf16.mxu0 %v4836_v45  ;;  %v3466_v63 = vsel %vm3465_vm7, %v3464_v39, %v3463_v8 }
 0xa5f   : > { %v3469_v23 = vsel %vm3468_vm8, %v3467_v4, %v3466_v63 }
 0xa60   : > { %v3472_v59 = vsel %vm3471_vm9, %v3470_v17, %v3469_v23 }
 0xa61   : > { %4472 = vmatpush3.bf16.msra.mxu0 %v4782_v58  ;;  %v3473_v6 = vpack.c.b16 %v3472_v59, %v3472_v59 }
 0xa62   : > { %4473 = vmatprep.subr.bf16.mxu0 %v4836_v45 }
 0xa65   : > { %4474 = vmatpush3.bf16.msra.mxu0 %v4783_v18 }
 0xa66   : > { %4475 = vmatprep.subr.bf16.mxu0 %v4836_v45 }
 0xa69   : > { %4476 = vmatpush3.bf16.msra.mxu0 %v4784_v20 }
 0xa6a   : > { %4477 = vmatprep.subr.bf16.mxu0 %v4836_v45 }
 0xa6d   : > { %4478 = vmatpush3.bf16.msra.mxu0 %v4785_v42 }
 0xa6e   : > { %4479 = vmatprep.subr.bf16.mxu0 %v4836_v45 }
 0xa71   : > { %4480 = vmatpush3.bf16.msra.mxu0 %v4786_v5 }
 0xa72   : > { %4481 = vmatprep.subr.bf16.mxu0 %v4836_v45 }
 0xa75   : > { %4482 = vmatpush3.bf16.msra.mxu0 %v4787_v29 }
 0xa78   : > { %4484 = vmatmul.mubr.bf16.vlgmr.msra.gmra.mxu0 %v3473_v6 }
 0xb38   : > { %v3557_v54 = vpop.f32.mrf.mxu0 }
 0xb39   : > { %v3558_v1 = vadd.f32 %v3962_v7, %v3557_v54 }
 0xb3a   : > { %v4485_v36 = vpop.f32.mrf.mxu0 }
 0xb3b   : > { %4788 = vtanh.f32 %v3558_v1 }
 0xb3c   : > { %v3560_v60 = vpop.f32.mrf.mxu0 }
 0xb3e   : > { %v4486_v50 = vpop.f32.mrf.mxu0 }
 0xb48   : > { %v4789_v26 = vpop.eup %4788 }
 0xb49   : > { %3564 = vst [vmem:[%s5064_s17] sm:$0x1f] %v4789_v26 }
 0xb4a PF: > { %s6065_s2 = sld [smem:[#allocation6_spill]] }
 0xb4b   : > { %s6066_s1 = sld [smem:[#allocation4_spill]] }
 0xb4c   : > { %s6067_s22 = sld [smem:[#allocation5_spill]] }
 0xb4d   : > { %s6068_s23 = sld [smem:[#allocation7_spill]] }
 0xb4e   : > { %s6069_s24 = sld [smem:[#allocation8_spill]] }
 0xb50   : > { %s30_s2 = sadd.s32 1, %s6065_s2  }
 0xb51   : > { %p27_p9 = scmp.ge.s32.totalorder %s30_s2, 6  }
 0xb53   :  { %29 = sbr.rel (!%p27_p9) target bundleno = 20 (0x14), region = 189 }

</bundles_post_ra>
